<compile_context>
chip_gen: v7x
topology: tpu7x:2x2x1
jax: 0.10.0
libtpu: 0.0.40
codegen_flags: <defaults>
</compile_context>

<pallas_src>
import functools

import jax
import jax.numpy as jnp
from jax import lax
from jax.experimental import pallas as pl
from jax.experimental.pallas import tpu as pltpu

LANE = 128
SUB = 8


def _cdiv(a, b):
    return -(-a // b)


def _round_up(x, m):
    return _cdiv(x, m) * m


def _pick_tiles(M, cap):
    """Row tile (multiple of 8) with at least 2 tiles so both v7x TCs get work."""
    nt = max(2, _cdiv(M, cap))
    tm = _round_up(_cdiv(M, nt), SUB)
    nt = max(2, _cdiv(M, tm))
    return tm, nt, tm * nt


# ----------------------------------------------------------------------------
# Pallas kernels
# ----------------------------------------------------------------------------
def _conv1_stats_kernel(p_ref, w_ref, y_ref, ps_ref, pss_ref):
    """Single wide-K matmul (taps stacked on the contraction axis) plus partial
    BN statistics taken from the f32 accumulator (never re-read from HBM)."""
    acc = jnp.dot(p_ref[...], w_ref[...], preferred_element_type=jnp.float32)
    y_ref[...] = acc.astype(y_ref.dtype)
    ps_ref[...] = jnp.sum(acc, axis=0, keepdims=True)[None]
    pss_ref[...] = jnp.sum(acc * acc, axis=0, keepdims=True)[None]


def _conv2_bn1_stats_kernel(y1_ref, s1_ref, b1_ref, w_ref,
                            y2_ref, ps_ref, pss_ref, apad_ref,
                            *, K, pad, Ho2, Wo2):
    """Fused per-image kernel: BN1 affine + ReLU on the conv1 output, zero
    padding into VMEM scratch, 3x3 stride-1 conv as 9 in-VMEM tap matmuls, and
    partial BN2 statistics.  The 9x duplicated taps never touch HBM."""
    Ho1, Wo1, Cp = y1_ref.shape
    a = jnp.maximum(
        y1_ref[...].astype(jnp.float32) * s1_ref[...] + b1_ref[...], 0.0)
    apad_ref[...] = jnp.zeros_like(apad_ref)            # zero border
    apad_ref[pad:pad + Ho1, pad:pad + Wo1, :] = a       # interior (f32)

    acc = jnp.zeros((Ho2 * Wo2, Cp), jnp.float32)
    t = 0
    for di in range(K):                                 # static, unrolled
        for dj in range(K):
            tap = apad_ref[di:di + Ho2, dj:dj + Wo2, :]
            tap = tap.reshape(Ho2 * Wo2, Cp).astype(jnp.bfloat16)
            acc += jnp.dot(tap, w_ref[t], preferred_element_type=jnp.float32)
            t += 1
    y2_ref[...] = acc.astype(y2_ref.dtype)
    ps_ref[...] = jnp.sum(acc, axis=0, keepdims=True)
    pss_ref[...] = jnp.sum(acc * acc, axis=0, keepdims=True)


def _shortcut_bn2_add_relu_kernel(y2_ref, xs_ref, wd_ref, s2_ref, b2_ref,
                                  o_ref):
    """Fused epilogue: 1x1 stride-2 shortcut matmul + BN2 affine + add + ReLU."""
    sc = jnp.dot(xs_ref[...], wd_ref[...], preferred_element_type=jnp.float32)
    v = y2_ref[...].astype(jnp.float32) * s2_ref[...] + b2_ref[...] + sc
    o_ref[...] = jnp.maximum(v, 0.0)


# ----------------------------------------------------------------------------
# Wrappers
# ----------------------------------------------------------------------------
def _conv1(patches, w, M):
    """patches: (M, Kc) bf16, w: (Kc, Cp) bf16 -> y (Mp, Cp) bf16, mean/var."""
    Kc = patches.shape[1]
    Cp = w.shape[1]
    tm, nt, Mp = _pick_tiles(M, cap=256)
    if Mp != M:
        patches = jnp.pad(patches, ((0, Mp - M), (0, 0)))
    y, ps, pss = pl.pallas_call(
        _conv1_stats_kernel,
        out_shape=(jax.ShapeDtypeStruct((Mp, Cp), jnp.bfloat16),
                   jax.ShapeDtypeStruct((nt, 1, Cp), jnp.float32),
                   jax.ShapeDtypeStruct((nt, 1, Cp), jnp.float32)),
        grid=(nt,),
        in_specs=[pl.BlockSpec((tm, Kc), lambda i: (i, 0)),
                  pl.BlockSpec((Kc, Cp), lambda i: (0, 0))],
        out_specs=[pl.BlockSpec((tm, Cp), lambda i: (i, 0)),
                   pl.BlockSpec((1, 1, Cp), lambda i: (i, 0, 0)),
                   pl.BlockSpec((1, 1, Cp), lambda i: (i, 0, 0))],
        compiler_params=pltpu.CompilerParams(
            dimension_semantics=("parallel",)),
    )(patches, w)
    s = jnp.sum(ps, axis=(0, 1))
    ss = jnp.sum(pss, axis=(0, 1))
    mean = s / M
    var = jnp.maximum(ss / M - mean * mean, 0.0)       # biased (BN training mode)
    return y, mean[None, :], var[None, :]


def _conv2_fused(y1_img, scale1, bias1, w2, *, K, pad):
    """y1_img (N, Ho1, Wo1, Cp) bf16 -> y2 (N*Ho2*Wo2, Cp) bf16, mean/var."""
    N, Ho1, Wo1, Cp = y1_img.shape
    Ho2 = Ho1 + 2 * pad - K + 1
    Wo2 = Wo1 + 2 * pad - K + 1
    M2b = Ho2 * Wo2
    kern = functools.partial(_conv2_bn1_stats_kernel, K=K, pad=pad,
                             Ho2=Ho2, Wo2=Wo2)
    y2, ps, pss = pl.pallas_call(
        kern,
        out_shape=(jax.ShapeDtypeStruct((N, M2b, Cp), jnp.bfloat16),
                   jax.ShapeDtypeStruct((N, 1, Cp), jnp.float32),
                   jax.ShapeDtypeStruct((N, 1, Cp), jnp.float32)),
        grid=(N,),
        in_specs=[pl.BlockSpec((None, Ho1, Wo1, Cp), lambda n: (n, 0, 0, 0)),
                  pl.BlockSpec((1, Cp), lambda n: (0, 0)),
                  pl.BlockSpec((1, Cp), lambda n: (0, 0)),
                  pl.BlockSpec((K * K, Cp, Cp), lambda n: (0, 0, 0))],
        out_specs=[pl.BlockSpec((None, M2b, Cp), lambda n: (n, 0, 0)),
                   pl.BlockSpec((None, 1, Cp), lambda n: (n, 0, 0)),
                   pl.BlockSpec((None, 1, Cp), lambda n: (n, 0, 0))],
        scratch_shapes=[pltpu.VMEM((Ho1 + 2 * pad, Wo1 + 2 * pad, Cp),
                                   jnp.float32)],
        compiler_params=pltpu.CompilerParams(
            dimension_semantics=("parallel",)),
    )(y1_img, scale1, bias1, w2)
    M2 = N * M2b
    s = jnp.sum(ps, axis=(0, 1))
    ss = jnp.sum(pss, axis=(0, 1))
    mean = s / M2
    var = jnp.maximum(ss / M2 - mean * mean, 0.0)
    return y2.reshape(M2, Cp), mean[None, :], var[None, :], (Ho2, Wo2)


def _shortcut_bn2_add_relu(y2, xs, wd, scale2, bias2, M):
    Cp = y2.shape[1]
    Cs = xs.shape[1]
    tm, nt, Mp = _pick_tiles(M, cap=1024)
    if Mp != M:
        y2 = jnp.pad(y2, ((0, Mp - M), (0, 0)))
        xs = jnp.pad(xs, ((0, Mp - M), (0, 0)))
    return pl.pallas_call(
        _shortcut_bn2_add_relu_kernel,
        out_shape=jax.ShapeDtypeStruct((Mp, Cp), jnp.float32),
        grid=(nt,),
        in_specs=[pl.BlockSpec((tm, Cp), lambda i: (i, 0)),
                  pl.BlockSpec((tm, Cs), lambda i: (i, 0)),
                  pl.BlockSpec((Cs, Cp), lambda i: (0, 0)),
                  pl.BlockSpec((1, Cp), lambda i: (0, 0)),
                  pl.BlockSpec((1, Cp), lambda i: (0, 0))],
        out_specs=pl.BlockSpec((tm, Cp), lambda i: (i, 0)),
        compiler_params=pltpu.CompilerParams(
            dimension_semantics=("parallel",)),
    )(y2, xs, wd, scale2, bias2)


# ----------------------------------------------------------------------------
# Glue helpers
# ----------------------------------------------------------------------------
def _pad_vec(v, cp, fill):
    C = v.shape[-1]
    return jnp.pad(v.astype(jnp.float32), ((0, 0), (0, cp - C)),
                   constant_values=fill)


# ----------------------------------------------------------------------------
# resi_block_down forward
# ----------------------------------------------------------------------------
def resi_block_down_forward(x_nchw, params, *, kernel=3, s=1, p=1, eps=1e-5):
    # TODO(synk): fused conv2/shortcut path supports conv2 stride s == 1 only.
    assert s == 1, "fused Pallas conv2/shortcut path requires s == 1"
    K = kernel
    x = jnp.transpose(x_nchw, (0, 2, 3, 1)).astype(jnp.bfloat16)   # NHWC, bf16 once
    N, H, W, Cin = x.shape
    Cout = params["w1"].shape[0]
    Cp = _round_up(Cout, LANE)                                     # lane-dense C

    g1 = _pad_vec(params["g1"], Cp, 1.0); b1 = _pad_vec(params["b1"], Cp, 0.0)
    g2 = _pad_vec(params["g2"], Cp, 1.0); b2 = _pad_vec(params["b2"], Cp, 0.0)

    # --- conv1 (3x3, stride 2, tiny Cin): taps stacked on the contraction axis
    xp = jnp.pad(x, ((0, 0), (p, p), (p, p), (0, 0)))
    Ho1 = (H + 2 * p - K) // 2 + 1
    Wo1 = (W + 2 * p - K) // 2 + 1
    M1 = N * Ho1 * Wo1
    taps = []
    for i in range(K):
        for j in range(K):
            taps.append(xp[:, i:i + 2 * (Ho1 - 1) + 1:2,
                            j:j + 2 * (Wo1 - 1) + 1:2, :])
    patches = jnp.concatenate(taps, axis=-1).reshape(M1, K * K * Cin)  # bf16
    Kc = _round_up(K * K * Cin, SUB)
    if Kc != K * K * Cin:
        patches = jnp.pad(patches, ((0, 0), (0, Kc - K * K * Cin)))

    w1 = jnp.transpose(params["w1"], (2, 3, 1, 0)).reshape(K * K * Cin, Cout)
    w1 = jnp.pad(w1, ((0, Kc - K * K * Cin), (0, Cp - Cout))).astype(jnp.bfloat16)

    y1, m1, v1 = _conv1(patches, w1, M1)
    scale1 = g1 * lax.rsqrt(v1 + eps)                 # BN1 folded into one FMA
    bias1 = b1 - m1 * scale1
    if y1.shape[0] != M1:
        y1 = y1[:M1]
    y1_img = y1.reshape(N, Ho1, Wo1, Cp)              # bf16, no spatial pad in HBM

    # --- conv2 (3x3, stride 1): fused BN1+ReLU + in-VMEM zero pad + conv + stats
    w2 = jnp.transpose(params["w2"], (2, 3, 1, 0)).reshape(K * K, Cout, Cout)
    w2 = jnp.pad(w2, ((0, 0), (0, Cp - Cout), (0, Cp - Cout))).astype(jnp.bfloat16)
    y2, m2, v2, (Ho2, Wo2) = _conv2_fused(y1_img, scale1, bias1, w2, K=K, pad=p)
    scale2 = g2 * lax.rsqrt(v2 + eps)
    bias2 = b2 - m2 * scale2

    # --- shortcut (1x1, stride 2) + BN2 + add + ReLU, fused
    M2 = N * Ho2 * Wo2
    xs = x[:, ::2, ::2, :].reshape(-1, Cin)           # (M2, Cin) bf16
    assert xs.shape[0] == M2
    wd = jnp.transpose(params["wd"][:, :, 0, 0], (1, 0))
    wd = jnp.pad(wd, ((0, 0), (0, Cp - Cout))).astype(jnp.bfloat16)

    out = _shortcut_bn2_add_relu(y2, xs, wd, scale2, bias2, M2)
    out = out[:M2, :Cout].reshape(N, Ho2, Wo2, Cout)
    return jnp.transpose(out, (0, 3, 1, 2))                        # NCHW, f32


# ----------------------------------------------------------------------------
# Pure-JAX reference (for correctness check)
# ----------------------------------------------------------------------------
def _ref_forward(x, params, *, kernel=3, s=1, p=1, eps=1e-5):
    dn = ("NCHW", "OIHW", "NCHW")

    def bn(y, g, b):
        m = y.mean(axis=(0, 2, 3))
        v = y.var(axis=(0, 2, 3))
        inv = lax.rsqrt(v + eps)
        return ((y - m[None, :, None, None]) * (g * inv)[None, :, None, None]
                + b[None, :, None, None])

    y1 = lax.conv_general_dilated(x, params["w1"], (2, 2), [(p, p), (p, p)],
                                  dimension_numbers=dn)
    y1 = jnp.maximum(bn(y1, params["g1"][0], params["b1"][0]), 0.0)
    y2 = lax.conv_general_dilated(y1, params["w2"], (s, s), [(p, p), (p, p)],
                                  dimension_numbers=dn)
    y2 = bn(y2, params["g2"][0], params["b2"][0])
    sc = lax.conv_general_dilated(x, params["wd"], (2, 2), [(0, 0), (0, 0)],
                                  dimension_numbers=dn)
    return jnp.maximum(y2 + sc, 0.0)


# ----------------------------------------------------------------------------
if __name__ == "__main__":
    # Module config: resi_block_down(in_channel=8, out_channel=8, kernel=3, s=1, p=1)
    in_channel, out_channel, kernel, s, p = 8, 8, 3, 1, 1
    cin = in_channel // 2                       # conv input channels = in_channel / 2
    N, H, W = 2, 16, 16

    key = jax.random.PRNGKey(0)
    kx, k1, k2, k3 = jax.random.split(key, 4)

    x = jax.random.normal(kx, (N, cin, H, W), dtype=jnp.float32)

    params = {
        "w1": 0.1 * jax.random.normal(k1, (out_channel, cin, kernel, kernel),
                                      dtype=jnp.float32),
        "w2": 0.1 * jax.random.normal(k2, (out_channel, out_channel, kernel, kernel),
                                      dtype=jnp.float32),
        "wd": 0.1 * jax.random.normal(k3, (out_channel, cin, 1, 1),
                                      dtype=jnp.float32),
        # BatchNorm affine params (PyTorch default init: gamma=1, beta=0)
        "g1": jnp.ones((1, out_channel), jnp.float32),
        "b1": jnp.zeros((1, out_channel), jnp.float32),
        "g2": jnp.ones((1, out_channel), jnp.float32),
        "b2": jnp.zeros((1, out_channel), jnp.float32),
    }

    fwd = jax.jit(functools.partial(resi_block_down_forward,
                                    kernel=kernel, s=s, p=p))
    out = jax.block_until_ready(fwd(x, params))

    ref = jax.block_until_ready(_ref_forward(x, params, kernel=kernel, s=s, p=p))
    assert out.shape == (N, out_channel, H // 2, W // 2), out.shape
    # bf16 MXU operands / bf16 intermediates with f32 stats vs. an all-f32 ref.
    assert jnp.allclose(out, ref, atol=5e-2, rtol=5e-2), \
        float(jnp.max(jnp.abs(out - ref)))

    print("KERNEL_OK")
</pallas_src>

<mosaic_0001>
module attributes {stable_mosaic.version = 11 : i64} {
  func.func @_conv1_stats_kernel(%arg0: i32, %arg1: memref<64x40xbf16, #tpu.memory_space<vmem>>, %arg2: memref<40x128xbf16, #tpu.memory_space<vmem>>, %arg3: memref<64x128xbf16, #tpu.memory_space<vmem>>, %arg4: memref<1x1x128xf32, #tpu.memory_space<vmem>>, %arg5: memref<1x1x128xf32, #tpu.memory_space<vmem>>) attributes {dimension_semantics = [#tpu.dimension_semantics<parallel>], iteration_bounds = array<i64: 2>, scalar_prefetch = 0 : i64, scratch_operands = 0 : i64, tpu.core_type = #tpu.core_type<tc>, window_params = [{transform_indices = @transform_0, window_bounds = array<i64: 64, 40>}, {pipeline_mode = #tpu.pipeline_mode<synchronous>, transform_indices = @transform_1, window_bounds = array<i64: 40, 128>}, {transform_indices = @transform_2, window_bounds = array<i64: 64, 128>}, {transform_indices = @transform_3, window_bounds = array<i64: 1, 1, 128>}, {transform_indices = @transform_4, window_bounds = array<i64: 1, 1, 128>}]} {
    %c0 = arith.constant 0 : index
    %c0_0 = arith.constant 0 : index
    %0 = vector.load %arg1[%c0, %c0_0] : memref<64x40xbf16, #tpu.memory_space<vmem>>, vector<64x40xbf16>
    %c0_1 = arith.constant 0 : index
    %c0_2 = arith.constant 0 : index
    %1 = vector.load %arg2[%c0_1, %c0_2] : memref<40x128xbf16, #tpu.memory_space<vmem>>, vector<40x128xbf16>
    %cst = arith.constant dense<0.000000e+00> : vector<64x128xf32>
    %2 = tpu.matmul %0, %1, %cst {dimension_numbers = #tpu.dot_dimension_numbers<[1], [0], [0], [1], [0, 0, 1, 1], [], []>} : vector<64x40xbf16>, vector<40x128xbf16>, vector<64x128xf32> -> vector<64x128xf32>
    %3 = arith.truncf %2 : vector<64x128xf32> to vector<64x128xbf16>
    %c0_3 = arith.constant 0 : index
    %c0_4 = arith.constant 0 : index
    %4 = vector.load %arg3[%c0_3, %c0_4] : memref<64x128xbf16, #tpu.memory_space<vmem>>, vector<64x128xbf16>
    tpu.vector_store %arg3[%c0_3, %c0_4], %3 {strides = array<i32>} : memref<64x128xbf16, #tpu.memory_space<vmem>>, vector<64x128xbf16>,
    %cst_5 = arith.constant dense<0.000000e+00> : vector<128xf32>
    %5 = vector.multi_reduction <add>, %2, %cst_5 [0] : vector<64x128xf32> to vector<128xf32>
    %6 = vector.shape_cast %5 : vector<128xf32> to vector<1x128xf32>
    %7 = vector.shape_cast %6 : vector<1x128xf32> to vector<1x1x128xf32>
    %c0_6 = arith.constant 0 : index
    %c0_7 = arith.constant 0 : index
    %c0_8 = arith.constant 0 : index
    %8 = vector.load %arg4[%c0_6, %c0_7, %c0_8] : memref<1x1x128xf32, #tpu.memory_space<vmem>>, vector<1x1x128xf32>
    tpu.vector_store %arg4[%c0_6, %c0_7, %c0_8], %7 {strides = array<i32>} : memref<1x1x128xf32, #tpu.memory_space<vmem>>, vector<1x1x128xf32>,
    %9 = arith.mulf %2, %2 : vector<64x128xf32>
    %cst_9 = arith.constant dense<0.000000e+00> : vector<128xf32>
    %10 = vector.multi_reduction <add>, %9, %cst_9 [0] : vector<64x128xf32> to vector<128xf32>
    %11 = vector.shape_cast %10 : vector<128xf32> to vector<1x128xf32>
    %12 = vector.shape_cast %11 : vector<1x128xf32> to vector<1x1x128xf32>
    %c0_10 = arith.constant 0 : index
    %c0_11 = arith.constant 0 : index
    %c0_12 = arith.constant 0 : index
    %13 = vector.load %arg5[%c0_10, %c0_11, %c0_12] : memref<1x1x128xf32, #tpu.memory_space<vmem>>, vector<1x1x128xf32>
    tpu.vector_store %arg5[%c0_10, %c0_11, %c0_12], %12 {strides = array<i32>} : memref<1x1x128xf32, #tpu.memory_space<vmem>>, vector<1x1x128xf32>,
    return
  }
  func.func @transform_0(%arg0: i32) -> (i32, i32) {
    %c0_i32 = arith.constant 0 : i32
    %c0_i32_0 = arith.constant 0 : i32
    return %arg0, %c0_i32 : i32, i32
  }
  func.func @transform_1(%arg0: i32) -> (i32, i32) {
    %c0_i32 = arith.constant 0 : i32
    %c0_i32_0 = arith.constant 0 : i32
    %c0_i32_1 = arith.constant 0 : i32
    return %c0_i32, %c0_i32_0 : i32, i32
  }
  func.func @transform_2(%arg0: i32) -> (i32, i32) {
    %c0_i32 = arith.constant 0 : i32
    %c0_i32_0 = arith.constant 0 : i32
    return %arg0, %c0_i32 : i32, i32
  }
  func.func @transform_3(%arg0: i32) -> (i32, i32, i32) {
    %c0_i32 = arith.constant 0 : i32
    %c0_i32_0 = arith.constant 0 : i32
    %c0_i32_1 = arith.constant 0 : i32
    return %arg0, %c0_i32, %c0_i32_0 : i32, i32, i32
  }
  func.func @transform_4(%arg0: i32) -> (i32, i32, i32) {
    %c0_i32 = arith.constant 0 : i32
    %c0_i32_0 = arith.constant 0 : i32
    %c0_i32_1 = arith.constant 0 : i32
    return %arg0, %c0_i32, %c0_i32_0 : i32, i32, i32
  }
}

module attributes {stable_mosaic.version = 11 : i64} {
  func.func @_conv2_bn1_stats_kernel(%arg0: i32, %arg1: memref<1x8x8x128xbf16, #tpu.memory_space<vmem>>, %arg2: memref<1x128xf32, #tpu.memory_space<vmem>>, %arg3: memref<1x128xf32, #tpu.memory_space<vmem>>, %arg4: memref<9x128x128xbf16, #tpu.memory_space<vmem>>, %arg5: memref<1x64x128xbf16, #tpu.memory_space<vmem>>, %arg6: memref<1x1x128xf32, #tpu.memory_space<vmem>>, %arg7: memref<1x1x128xf32, #tpu.memory_space<vmem>>, %arg8: memref<10x10x128xf32, #tpu.memory_space<vmem>>) attributes {dimension_semantics = [#tpu.dimension_semantics<parallel>], iteration_bounds = array<i64: 2>, scalar_prefetch = 0 : i64, scratch_operands = 1 : i64, tpu.core_type = #tpu.core_type<tc>, window_params = [{transform_indices = @transform_0, window_bounds = array<i64: 1, 8, 8, 128>}, {pipeline_mode = #tpu.pipeline_mode<synchronous>, transform_indices = @transform_1, window_bounds = array<i64: 1, 128>}, {pipeline_mode = #tpu.pipeline_mode<synchronous>, transform_indices = @transform_2, window_bounds = array<i64: 1, 128>}, {pipeline_mode = #tpu.pipeline_mode<synchronous>, transform_indices = @transform_3, window_bounds = array<i64: 9, 128, 128>}, {transform_indices = @transform_4, window_bounds = array<i64: 1, 64, 128>}, {transform_indices = @transform_5, window_bounds = array<i64: 1, 1, 128>}, {transform_indices = @transform_6, window_bounds = array<i64: 1, 1, 128>}]} {
    %c0 = arith.constant 0 : index
    %c0_0 = arith.constant 0 : index
    %c0_1 = arith.constant 0 : index
    %c0_2 = arith.constant 0 : index
    %0 = vector.load %arg1[%c0, %c0_0, %c0_1, %c0_2] : memref<1x8x8x128xbf16, #tpu.memory_space<vmem>>, vector<1x8x8x128xbf16>
    %1 = vector.shape_cast %0 : vector<1x8x8x128xbf16> to vector<8x8x128xbf16>
    %2 = arith.extf %1 : vector<8x8x128xbf16> to vector<8x8x128xf32>
    %c0_3 = arith.constant 0 : index
    %c0_4 = arith.constant 0 : index
    %3 = vector.load %arg2[%c0_3, %c0_4] : memref<1x128xf32, #tpu.memory_space<vmem>>, vector<1x128xf32>
    %4 = vector.shape_cast %3 : vector<1x128xf32> to vector<1x1x128xf32>
    %5 = vector.broadcast %4 : vector<1x1x128xf32> to vector<8x8x128xf32>
    %6 = arith.mulf %2, %5 : vector<8x8x128xf32>
    %c0_5 = arith.constant 0 : index
    %c0_6 = arith.constant 0 : index
    %7 = vector.load %arg3[%c0_5, %c0_6] : memref<1x128xf32, #tpu.memory_space<vmem>>, vector<1x128xf32>
    %8 = vector.shape_cast %7 : vector<1x128xf32> to vector<1x1x128xf32>
    %9 = vector.broadcast %8 : vector<1x1x128xf32> to vector<8x8x128xf32>
    %10 = arith.addf %6, %9 : vector<8x8x128xf32>
    %cst = arith.constant 0.000000e+00 : f32
    %11 = vector.broadcast %cst : f32 to vector<8x8x128xf32>
    %12 = arith.maximumf %10, %11 : vector<8x8x128xf32>
    %cst_7 = arith.constant 0.000000e+00 : f32
    %13 = vector.broadcast %cst_7 : f32 to vector<10x10x128xf32>
    %c0_8 = arith.constant 0 : index
    %c0_9 = arith.constant 0 : index
    %c0_10 = arith.constant 0 : index
    %14 = vector.load %arg8[%c0_8, %c0_9, %c0_10] : memref<10x10x128xf32, #tpu.memory_space<vmem>>, vector<10x10x128xf32>
    tpu.vector_store %arg8[%c0_8, %c0_9, %c0_10], %13 {strides = array<i32>} : memref<10x10x128xf32, #tpu.memory_space<vmem>>, vector<10x10x128xf32>,
    %c1 = arith.constant 1 : index
    %c1_11 = arith.constant 1 : index
    %c0_12 = arith.constant 0 : index
    %15 = vector.load %arg8[%c1, %c1_11, %c0_12] : memref<10x10x128xf32, #tpu.memory_space<vmem>>, vector<8x8x128xf32>
    tpu.vector_store %arg8[%c1, %c1_11, %c0_12], %12 {strides = array<i32>} : memref<10x10x128xf32, #tpu.memory_space<vmem>>, vector<8x8x128xf32>,
    %cst_13 = arith.constant 0.000000e+00 : f32
    %16 = vector.broadcast %cst_13 : f32 to vector<64x128xf32>
    %c0_14 = arith.constant 0 : index
    %c0_15 = arith.constant 0 : index
    %c0_16 = arith.constant 0 : index
    %17 = vector.load %arg8[%c0_14, %c0_15, %c0_16] : memref<10x10x128xf32, #tpu.memory_space<vmem>>, vector<8x8x128xf32>
    %18 = vector.shape_cast %17 : vector<8x8x128xf32> to vector<64x128xf32>
    %19 = arith.truncf %18 : vector<64x128xf32> to vector<64x128xbf16>
    %c0_17 = arith.constant 0 : index
    %c0_18 = arith.constant 0 : index
    %c0_19 = arith.constant 0 : index
    %20 = vector.load %arg4[%c0_17, %c0_18, %c0_19] : memref<9x128x128xbf16, #tpu.memory_space<vmem>>, vector<1x128x128xbf16>
    %21 = vector.shape_cast %20 : vector<1x128x128xbf16> to vector<128x128xbf16>
    %cst_20 = arith.constant dense<0.000000e+00> : vector<64x128xf32>
    %22 = tpu.matmul %19, %21, %cst_20 {dimension_numbers = #tpu.dot_dimension_numbers<[1], [0], [0], [1], [0, 0, 1, 1], [], []>} : vector<64x128xbf16>, vector<128x128xbf16>, vector<64x128xf32> -> vector<64x128xf32>
    %23 = arith.addf %16, %22 : vector<64x128xf32>
    %c0_21 = arith.constant 0 : index
    %c1_22 = arith.constant 1 : index
    %c0_23 = arith.constant 0 : index
    %24 = vector.load %arg8[%c0_21, %c1_22, %c0_23] : memref<10x10x128xf32, #tpu.memory_space<vmem>>, vector<8x8x128xf32>
    %25 = vector.shape_cast %24 : vector<8x8x128xf32> to vector<64x128xf32>
    %26 = arith.truncf %25 : vector<64x128xf32> to vector<64x128xbf16>
    %c1_24 = arith.constant 1 : index
    %c0_25 = arith.constant 0 : index
    %c0_26 = arith.constant 0 : index
    %27 = vector.load %arg4[%c1_24, %c0_25, %c0_26] : memref<9x128x128xbf16, #tpu.memory_space<vmem>>, vector<1x128x128xbf16>
    %28 = vector.shape_cast %27 : vector<1x128x128xbf16> to vector<128x128xbf16>
    %cst_27 = arith.constant dense<0.000000e+00> : vector<64x128xf32>
    %29 = tpu.matmul %26, %28, %cst_27 {dimension_numbers = #tpu.dot_dimension_numbers<[1], [0], [0], [1], [0, 0, 1, 1], [], []>} : vector<64x128xbf16>, vector<128x128xbf16>, vector<64x128xf32> -> vector<64x128xf32>
    %30 = arith.addf %23, %29 : vector<64x128xf32>
    %c0_28 = arith.constant 0 : index
    %c2 = arith.constant 2 : index
    %c0_29 = arith.constant 0 : index
    %31 = vector.load %arg8[%c0_28, %c2, %c0_29] : memref<10x10x128xf32, #tpu.memory_space<vmem>>, vector<8x8x128xf32>
    %32 = vector.shape_cast %31 : vector<8x8x128xf32> to vector<64x128xf32>
    %33 = arith.truncf %32 : vector<64x128xf32> to vector<64x128xbf16>
    %c2_30 = arith.constant 2 : index
    %c0_31 = arith.constant 0 : index
    %c0_32 = arith.constant 0 : index
    %34 = vector.load %arg4[%c2_30, %c0_31, %c0_32] : memref<9x128x128xbf16, #tpu.memory_space<vmem>>, vector<1x128x128xbf16>
    %35 = vector.shape_cast %34 : vector<1x128x128xbf16> to vector<128x128xbf16>
    %cst_33 = arith.constant dense<0.000000e+00> : vector<64x128xf32>
    %36 = tpu.matmul %33, %35, %cst_33 {dimension_numbers = #tpu.dot_dimension_numbers<[1], [0], [0], [1], [0, 0, 1, 1], [], []>} : vector<64x128xbf16>, vector<128x128xbf16>, vector<64x128xf32> -> vector<64x128xf32>
    %37 = arith.addf %30, %36 : vector<64x128xf32>
    %c1_34 = arith.constant 1 : index
    %c0_35 = arith.constant 0 : index
    %c0_36 = arith.constant 0 : index
    %38 = vector.load %arg8[%c1_34, %c0_35, %c0_36] : memref<10x10x128xf32, #tpu.memory_space<vmem>>, vector<8x8x128xf32>
    %39 = vector.shape_cast %38 : vector<8x8x128xf32> to vector<64x128xf32>
    %40 = arith.truncf %39 : vector<64x128xf32> to vector<64x128xbf16>
    %c3 = arith.constant 3 : index
    %c0_37 = arith.constant 0 : index
    %c0_38 = arith.constant 0 : index
    %41 = vector.load %arg4[%c3, %c0_37, %c0_38] : memref<9x128x128xbf16, #tpu.memory_space<vmem>>, vector<1x128x128xbf16>
    %42 = vector.shape_cast %41 : vector<1x128x128xbf16> to vector<128x128xbf16>
    %cst_39 = arith.constant dense<0.000000e+00> : vector<64x128xf32>
    %43 = tpu.matmul %40, %42, %cst_39 {dimension_numbers = #tpu.dot_dimension_numbers<[1], [0], [0], [1], [0, 0, 1, 1], [], []>} : vector<64x128xbf16>, vector<128x128xbf16>, vector<64x128xf32> -> vector<64x128xf32>
    %44 = arith.addf %37, %43 : vector<64x128xf32>
    %c1_40 = arith.constant 1 : index
    %c1_41 = arith.constant 1 : index
    %c0_42 = arith.constant 0 : index
    %45 = vector.load %arg8[%c1_40, %c1_41, %c0_42] : memref<10x10x128xf32, #tpu.memory_space<vmem>>, vector<8x8x128xf32>
    %46 = vector.shape_cast %45 : vector<8x8x128xf32> to vector<64x128xf32>
    %47 = arith.truncf %46 : vector<64x128xf32> to vector<64x128xbf16>
    %c4 = arith.constant 4 : index
    %c0_43 = arith.constant 0 : index
    %c0_44 = arith.constant 0 : index
    %48 = vector.load %arg4[%c4, %c0_43, %c0_44] : memref<9x128x128xbf16, #tpu.memory_space<vmem>>, vector<1x128x128xbf16>
    %49 = vector.shape_cast %48 : vector<1x128x128xbf16> to vector<128x128xbf16>
    %cst_45 = arith.constant dense<0.000000e+00> : vector<64x128xf32>
    %50 = tpu.matmul %47, %49, %cst_45 {dimension_numbers = #tpu.dot_dimension_numbers<[1], [0], [0], [1], [0, 0, 1, 1], [], []>} : vector<64x128xbf16>, vector<128x128xbf16>, vector<64x128xf32> -> vector<64x128xf32>
    %51 = arith.addf %44, %50 : vector<64x128xf32>
    %c1_46 = arith.constant 1 : index
    %c2_47 = arith.constant 2 : index
    %c0_48 = arith.constant 0 : index
    %52 = vector.load %arg8[%c1_46, %c2_47, %c0_48] : memref<10x10x128xf32, #tpu.memory_space<vmem>>, vector<8x8x128xf32>
    %53 = vector.shape_cast %52 : vector<8x8x128xf32> to vector<64x128xf32>
    %54 = arith.truncf %53 : vector<64x128xf32> to vector<64x128xbf16>
    %c5 = arith.constant 5 : index
    %c0_49 = arith.constant 0 : index
    %c0_50 = arith.constant 0 : index
    %55 = vector.load %arg4[%c5, %c0_49, %c0_50] : memref<9x128x128xbf16, #tpu.memory_space<vmem>>, vector<1x128x128xbf16>
    %56 = vector.shape_cast %55 : vector<1x128x128xbf16> to vector<128x128xbf16>
    %cst_51 = arith.constant dense<0.000000e+00> : vector<64x128xf32>
    %57 = tpu.matmul %54, %56, %cst_51 {dimension_numbers = #tpu.dot_dimension_numbers<[1], [0], [0], [1], [0, 0, 1, 1], [], []>} : vector<64x128xbf16>, vector<128x128xbf16>, vector<64x128xf32> -> vector<64x128xf32>
    %58 = arith.addf %51, %57 : vector<64x128xf32>
    %c2_52 = arith.constant 2 : index
    %c0_53 = arith.constant 0 : index
    %c0_54 = arith.constant 0 : index
    %59 = vector.load %arg8[%c2_52, %c0_53, %c0_54] : memref<10x10x128xf32, #tpu.memory_space<vmem>>, vector<8x8x128xf32>
    %60 = vector.shape_cast %59 : vector<8x8x128xf32> to vector<64x128xf32>
    %61 = arith.truncf %60 : vector<64x128xf32> to vector<64x128xbf16>
    %c6 = arith.constant 6 : index
    %c0_55 = arith.constant 0 : index
    %c0_56 = arith.constant 0 : index
    %62 = vector.load %arg4[%c6, %c0_55, %c0_56] : memref<9x128x128xbf16, #tpu.memory_space<vmem>>, vector<1x128x128xbf16>
    %63 = vector.shape_cast %62 : vector<1x128x128xbf16> to vector<128x128xbf16>
    %cst_57 = arith.constant dense<0.000000e+00> : vector<64x128xf32>
    %64 = tpu.matmul %61, %63, %cst_57 {dimension_numbers = #tpu.dot_dimension_numbers<[1], [0], [0], [1], [0, 0, 1, 1], [], []>} : vector<64x128xbf16>, vector<128x128xbf16>, vector<64x128xf32> -> vector<64x128xf32>
    %65 = arith.addf %58, %64 : vector<64x128xf32>
    %c2_58 = arith.constant 2 : index
    %c1_59 = arith.constant 1 : index
    %c0_60 = arith.constant 0 : index
    %66 = vector.load %arg8[%c2_58, %c1_59, %c0_60] : memref<10x10x128xf32, #tpu.memory_space<vmem>>, vector<8x8x128xf32>
    %67 = vector.shape_cast %66 : vector<8x8x128xf32> to vector<64x128xf32>
    %68 = arith.truncf %67 : vector<64x128xf32> to vector<64x128xbf16>
    %c7 = arith.constant 7 : index
    %c0_61 = arith.constant 0 : index
    %c0_62 = arith.constant 0 : index
    %69 = vector.load %arg4[%c7, %c0_61, %c0_62] : memref<9x128x128xbf16, #tpu.memory_space<vmem>>, vector<1x128x128xbf16>
    %70 = vector.shape_cast %69 : vector<1x128x128xbf16> to vector<128x128xbf16>
    %cst_63 = arith.constant dense<0.000000e+00> : vector<64x128xf32>
    %71 = tpu.matmul %68, %70, %cst_63 {dimension_numbers = #tpu.dot_dimension_numbers<[1], [0], [0], [1], [0, 0, 1, 1], [], []>} : vector<64x128xbf16>, vector<128x128xbf16>, vector<64x128xf32> -> vector<64x128xf32>
    %72 = arith.addf %65, %71 : vector<64x128xf32>
    %c2_64 = arith.constant 2 : index
    %c2_65 = arith.constant 2 : index
    %c0_66 = arith.constant 0 : index
    %73 = vector.load %arg8[%c2_64, %c2_65, %c0_66] : memref<10x10x128xf32, #tpu.memory_space<vmem>>, vector<8x8x128xf32>
    %74 = vector.shape_cast %73 : vector<8x8x128xf32> to vector<64x128xf32>
    %75 = arith.truncf %74 : vector<64x128xf32> to vector<64x128xbf16>
    %c8 = arith.constant 8 : index
    %c0_67 = arith.constant 0 : index
    %c0_68 = arith.constant 0 : index
    %76 = vector.load %arg4[%c8, %c0_67, %c0_68] : memref<9x128x128xbf16, #tpu.memory_space<vmem>>, vector<1x128x128xbf16>
    %77 = vector.shape_cast %76 : vector<1x128x128xbf16> to vector<128x128xbf16>
    %cst_69 = arith.constant dense<0.000000e+00> : vector<64x128xf32>
    %78 = tpu.matmul %75, %77, %cst_69 {dimension_numbers = #tpu.dot_dimension_numbers<[1], [0], [0], [1], [0, 0, 1, 1], [], []>} : vector<64x128xbf16>, vector<128x128xbf16>, vector<64x128xf32> -> vector<64x128xf32>
    %79 = arith.addf %72, %78 : vector<64x128xf32>
    %80 = arith.truncf %79 : vector<64x128xf32> to vector<64x128xbf16>
    %c0_70 = arith.constant 0 : index
    %c0_71 = arith.constant 0 : index
    %c0_72 = arith.constant 0 : index
    %81 = vector.load %arg5[%c0_70, %c0_71, %c0_72] : memref<1x64x128xbf16, #tpu.memory_space<vmem>>, vector<1x64x128xbf16>
    %82 = vector.shape_cast %81 : vector<1x64x128xbf16> to vector<64x128xbf16>
    %83 = vector.shape_cast %80 : vector<64x128xbf16> to vector<1x64x128xbf16>
    tpu.vector_store %arg5[%c0_70, %c0_71, %c0_72], %83 {strides = array<i32>} : memref<1x64x128xbf16, #tpu.memory_space<vmem>>, vector<1x64x128xbf16>,
    %cst_73 = arith.constant dense<0.000000e+00> : vector<128xf32>
    %84 = vector.multi_reduction <add>, %79, %cst_73 [0] : vector<64x128xf32> to vector<128xf32>
    %85 = vector.shape_cast %84 : vector<128xf32> to vector<1x128xf32>
    %c0_74 = arith.constant 0 : index
    %c0_75 = arith.constant 0 : index
    %c0_76 = arith.constant 0 : index
    %86 = vector.load %arg6[%c0_74, %c0_75, %c0_76] : memref<1x1x128xf32, #tpu.memory_space<vmem>>, vector<1x1x128xf32>
    %87 = vector.shape_cast %86 : vector<1x1x128xf32> to vector<1x128xf32>
    %88 = vector.shape_cast %85 : vector<1x128xf32> to vector<1x1x128xf32>
    tpu.vector_store %arg6[%c0_74, %c0_75, %c0_76], %88 {strides = array<i32>} : memref<1x1x128xf32, #tpu.memory_space<vmem>>, vector<1x1x128xf32>,
    %89 = arith.mulf %79, %79 : vector<64x128xf32>
    %cst_77 = arith.constant dense<0.000000e+00> : vector<128xf32>
    %90 = vector.multi_reduction <add>, %89, %cst_77 [0] : vector<64x128xf32> to vector<128xf32>
    %91 = vector.shape_cast %90 : vector<128xf32> to vector<1x128xf32>
    %c0_78 = arith.constant 0 : index
    %c0_79 = arith.constant 0 : index
    %c0_80 = arith.constant 0 : index
    %92 = vector.load %arg7[%c0_78, %c0_79, %c0_80] : memref<1x1x128xf32, #tpu.memory_space<vmem>>, vector<1x1x128xf32>
    %93 = vector.shape_cast %92 : vector<1x1x128xf32> to vector<1x128xf32>
    %94 = vector.shape_cast %91 : vector<1x128xf32> to vector<1x1x128xf32>
    tpu.vector_store %arg7[%c0_78, %c0_79, %c0_80], %94 {strides = array<i32>} : memref<1x1x128xf32, #tpu.memory_space<vmem>>, vector<1x1x128xf32>,
    return
  }
  func.func @transform_0(%arg0: i32) -> (i32, i32, i32, i32) {
    %c0_i32 = arith.constant 0 : i32
    %c0_i32_0 = arith.constant 0 : i32
    %c0_i32_1 = arith.constant 0 : i32
    %c0_i32_2 = arith.constant 0 : i32
    return %arg0, %c0_i32, %c0_i32_0, %c0_i32_1 : i32, i32, i32, i32
  }
  func.func @transform_1(%arg0: i32) -> (i32, i32) {
    %c0_i32 = arith.constant 0 : i32
    %c0_i32_0 = arith.constant 0 : i32
    %c0_i32_1 = arith.constant 0 : i32
    return %c0_i32, %c0_i32_0 : i32, i32
  }
  func.func @transform_2(%arg0: i32) -> (i32, i32) {
    %c0_i32 = arith.constant 0 : i32
    %c0_i32_0 = arith.constant 0 : i32
    %c0_i32_1 = arith.constant 0 : i32
    return %c0_i32, %c0_i32_0 : i32, i32
  }
  func.func @transform_3(%arg0: i32) -> (i32, i32, i32) {
    %c0_i32 = arith.constant 0 : i32
    %c0_i32_0 = arith.constant 0 : i32
    %c0_i32_1 = arith.constant 0 : i32
    %c0_i32_2 = arith.constant 0 : i32
    return %c0_i32, %c0_i32_0, %c0_i32_1 : i32, i32, i32
  }
  func.func @transform_4(%arg0: i32) -> (i32, i32, i32) {
    %c0_i32 = arith.constant 0 : i32
    %c0_i32_0 = arith.constant 0 : i32
    %c0_i32_1 = arith.constant 0 : i32
    return %arg0, %c0_i32, %c0_i32_0 : i32, i32, i32
  }
  func.func @transform_5(%arg0: i32) -> (i32, i32, i32) {
    %c0_i32 = arith.constant 0 : i32
    %c0_i32_0 = arith.constant 0 : i32
    %c0_i32_1 = arith.constant 0 : i32
    return %arg0, %c0_i32, %c0_i32_0 : i32, i32, i32
  }
  func.func @transform_6(%arg0: i32) -> (i32, i32, i32) {
    %c0_i32 = arith.constant 0 : i32
    %c0_i32_0 = arith.constant 0 : i32
    %c0_i32_1 = arith.constant 0 : i32
    return %arg0, %c0_i32, %c0_i32_0 : i32, i32, i32
  }
}

module attributes {stable_mosaic.version = 11 : i64} {
  func.func @_shortcut_bn2_add_relu_kernel(%arg0: i32, %arg1: memref<64x128xbf16, #tpu.memory_space<vmem>>, %arg2: memref<64x4xbf16, #tpu.memory_space<vmem>>, %arg3: memref<4x128xbf16, #tpu.memory_space<vmem>>, %arg4: memref<1x128xf32, #tpu.memory_space<vmem>>, %arg5: memref<1x128xf32, #tpu.memory_space<vmem>>, %arg6: memref<64x128xf32, #tpu.memory_space<vmem>>) attributes {dimension_semantics = [#tpu.dimension_semantics<parallel>], iteration_bounds = array<i64: 2>, scalar_prefetch = 0 : i64, scratch_operands = 0 : i64, tpu.core_type = #tpu.core_type<tc>, window_params = [{transform_indices = @transform_0, window_bounds = array<i64: 64, 128>}, {transform_indices = @transform_1, window_bounds = array<i64: 64, 4>}, {pipeline_mode = #tpu.pipeline_mode<synchronous>, transform_indices = @transform_2, window_bounds = array<i64: 4, 128>}, {pipeline_mode = #tpu.pipeline_mode<synchronous>, transform_indices = @transform_3, window_bounds = array<i64: 1, 128>}, {pipeline_mode = #tpu.pipeline_mode<synchronous>, transform_indices = @transform_4, window_bounds = array<i64: 1, 128>}, {transform_indices = @transform_5, window_bounds = array<i64: 64, 128>}]} {
    %c0 = arith.constant 0 : index
    %c0_0 = arith.constant 0 : index
    %0 = vector.load %arg2[%c0, %c0_0] : memref<64x4xbf16, #tpu.memory_space<vmem>>, vector<64x4xbf16>
    %c0_1 = arith.constant 0 : index
    %c0_2 = arith.constant 0 : index
    %1 = vector.load %arg3[%c0_1, %c0_2] : memref<4x128xbf16, #tpu.memory_space<vmem>>, vector<4x128xbf16>
    %cst = arith.constant dense<0.000000e+00> : vector<64x128xf32>
    %2 = tpu.matmul %0, %1, %cst {dimension_numbers = #tpu.dot_dimension_numbers<[1], [0], [0], [1], [0, 0, 1, 1], [], []>} : vector<64x4xbf16>, vector<4x128xbf16>, vector<64x128xf32> -> vector<64x128xf32>
    %c0_3 = arith.constant 0 : index
    %c0_4 = arith.constant 0 : index
    %3 = vector.load %arg1[%c0_3, %c0_4] : memref<64x128xbf16, #tpu.memory_space<vmem>>, vector<64x128xbf16>
    %4 = arith.extf %3 : vector<64x128xbf16> to vector<64x128xf32>
    %c0_5 = arith.constant 0 : index
    %c0_6 = arith.constant 0 : index
    %5 = vector.load %arg4[%c0_5, %c0_6] : memref<1x128xf32, #tpu.memory_space<vmem>>, vector<1x128xf32>
    %6 = vector.broadcast %5 : vector<1x128xf32> to vector<64x128xf32>
    %7 = arith.mulf %4, %6 : vector<64x128xf32>
    %c0_7 = arith.constant 0 : index
    %c0_8 = arith.constant 0 : index
    %8 = vector.load %arg5[%c0_7, %c0_8] : memref<1x128xf32, #tpu.memory_space<vmem>>, vector<1x128xf32>
    %9 = vector.broadcast %8 : vector<1x128xf32> to vector<64x128xf32>
    %10 = arith.addf %7, %9 : vector<64x128xf32>
    %11 = arith.addf %10, %2 : vector<64x128xf32>
    %cst_9 = arith.constant 0.000000e+00 : f32
    %12 = vector.broadcast %cst_9 : f32 to vector<64x128xf32>
    %13 = arith.maximumf %11, %12 : vector<64x128xf32>
    %c0_10 = arith.constant 0 : index
    %c0_11 = arith.constant 0 : index
    %14 = vector.load %arg6[%c0_10, %c0_11] : memref<64x128xf32, #tpu.memory_space<vmem>>, vector<64x128xf32>
    tpu.vector_store %arg6[%c0_10, %c0_11], %13 {strides = array<i32>} : memref<64x128xf32, #tpu.memory_space<vmem>>, vector<64x128xf32>,
    return
  }
  func.func @transform_0(%arg0: i32) -> (i32, i32) {
    %c0_i32 = arith.constant 0 : i32
    %c0_i32_0 = arith.constant 0 : i32
    return %arg0, %c0_i32 : i32, i32
  }
  func.func @transform_1(%arg0: i32) -> (i32, i32) {
    %c0_i32 = arith.constant 0 : i32
    %c0_i32_0 = arith.constant 0 : i32
    return %arg0, %c0_i32 : i32, i32
  }
  func.func @transform_2(%arg0: i32) -> (i32, i32) {
    %c0_i32 = arith.constant 0 : i32
    %c0_i32_0 = arith.constant 0 : i32
    %c0_i32_1 = arith.constant 0 : i32
    return %c0_i32, %c0_i32_0 : i32, i32
  }
  func.func @transform_3(%arg0: i32) -> (i32, i32) {
    %c0_i32 = arith.constant 0 : i32
    %c0_i32_0 = arith.constant 0 : i32
    %c0_i32_1 = arith.constant 0 : i32
    return %c0_i32, %c0_i32_0 : i32, i32
  }
  func.func @transform_4(%arg0: i32) -> (i32, i32) {
    %c0_i32 = arith.constant 0 : i32
    %c0_i32_0 = arith.constant 0 : i32
    %c0_i32_1 = arith.constant 0 : i32
    return %c0_i32, %c0_i32_0 : i32, i32
  }
  func.func @transform_5(%arg0: i32) -> (i32, i32) {
    %c0_i32 = arith.constant 0 : i32
    %c0_i32_0 = arith.constant 0 : i32
    return %arg0, %c0_i32 : i32, i32
  }
}

</mosaic_0001>

<bundles_post_ra>
// kernel: resi_block_down_forward.3
= control target key start
LH: loop header
LB: loop body
LE: loop exit
PB: predicated region body
PF: predicated region fallthrough
CT: control target
= control target key end

     0   :  { %s669_s15 = smov 0   ;;  %s706_s0 = inlined_call_operand.vmem [shape: bf16[128,40], index: 0, kind: input, shape index: {}]   ;;  %s707_s1 = inlined_call_operand.vmem [shape: bf16[40,128], index: 1, kind: input, shape index: {}]   ;;  %s708_s2 = inlined_call_operand.vmem [shape: bf16[128,128], index: 2, kind: output, shape index: {0}]   ;;  %s709_s3 = inlined_call_operand.vmem [shape: f32[2,1,128], index: 3, kind: output, shape index: {1}]   ;;  %s710_s4 = inlined_call_operand.vmem [shape: f32[2,1,128], index: 4, kind: output, shape index: {2}]  }
   0x1 LB: > { %s675_s16 = sadd.s32 4294967295, %s642_s15   ;;  %p535_p0 = scmp.ge.s32.totalorder %s642_s15, 1  ;;  %s642_s15 = sphi %s669_s15, %s15_s15  }
   0x2   : > { %p168_p1 = scmp.lt.s32.totalorder %s642_s15, 3 }
   0x4   : > { %p169_p2 = pnand %p535_p0, %p168_p1 }
   0x5   : > { %v629_v0 = vld [vmem:[%s707_s1] sm:$0xff] (!%p169_p2)   ;;  %v630_v1 = vld [vmem:[%s707_s1 + $0x8] sm:$0xff] (!%p169_p2)   ;;  %s536_s21 = sshll.u32 (!%p169_p2), %s675_s16, 3  ;;  %v631_v2 = vld [vmem:[%s707_s1 + $0x10] ss:$0 sps:$4 sm:$0xff] (!%p169_p2)   ;;  %vm280_vm0 = vcmask (!%p169_p2), 1043456  }
   0x6   : > { %172 = sbr.rel (%p169_p2) target bundleno = 262 (0x106), region = 28  ;;  %599 = vmatprep.subr.bf16.mxu0 (!%p169_p2), %v629_v0  ;;  %613 = vmatprep.subr.bf16.mxu1 (!%p169_p2), %v629_v0  ;;  %p201_p3 = scmp.lt.s32.totalorder (!%p169_p2), %s536_s21, 15  ;;  %vm267_vm1 = vcmask (!%p169_p2), 326656   ;;  %v282_v3 = vsel (!%p169_p2), %vm280_vm0, %v631_v2, 0 }
   0x7   : > { %600 = vmatpush3.bf16.msra.mxu0 (!%p169_p2), %v629_v0  ;;  %616 = vmatpush3.bf16.msra.mxu1 (!%p169_p2), %v629_v0  ;;  %p212_p4 = scmp.lt.s32.totalorder (!%p169_p2), %s675_s16, 1 }
   0x8   : > { %601 = vmatprep.subr.bf16.mxu0 (!%p169_p2), %v630_v1  ;;  %614 = vmatprep.subr.bf16.mxu1 (!%p169_p2), %v630_v1 }
   0xb   : > { %602 = vmatpush3.bf16.msra.mxu0 (!%p169_p2), %v630_v1  ;;  %617 = vmatpush3.bf16.msra.mxu1 (!%p169_p2), %v630_v1 }
   0xc   : > { %619 = vmatprep.subr.msk.bf16.mxu0 (!%p169_p2), %vm280_vm0, %v631_v2  ;;  %620 = vmatprep.subr.msk.bf16.mxu1 (!%p169_p2), %vm280_vm0, %v631_v2 }
   0xd   : > { %s712_s21 = smov (!%p201_p3, %s536_s21), 15  ;;  %s714_s16 = smov (!%p212_p4, %s675_s16), 1 }
   0xe   : > { %s537_s24 = sshll.u32 %s712_s21, 2  ;;  %s214_s7 = scalar_lea.vmem %s709_s3, %s714_s16 }
   0xf   : > { %s204_s27 = scalar_lea.vmem %s706_s0, %s537_s24  ;;  %604 = vmatpush3.bf16.msra.mxu0 %v282_v3  ;;  %618 = vmatpush3.bf16.msra.mxu1 %v282_v3  ;;  %s210_s30 = scalar_lea.vmem %s708_s2, %s537_s24 }
  0x10   : > { %v632_v4 = vld [vmem:[%s204_s27] sm:$0xff]   ;;  %v633_v5 = vld [vmem:[%s204_s27 + $0x8] sm:$0xff]   ;;  %v634_v6 = vld [vmem:[%s204_s27 + $0x10] sm:$0xff]   ;;  %s217_s10 = scalar_lea.vmem %s710_s4, %s714_s16 }
  0x11   : > { %605 = vmatprep.mubr.msk.bf16.mxu0 %vm267_vm1, %v632_v4  ;;  %v635_v7 = vld [vmem:[%s204_s27 + $0x18] sm:$0xff]   ;;  %609 = vmatprep.mubr.msk.bf16.mxu1 %vm267_vm1, %v634_v6 }
  0x12   : > { %606 = vmatmul.mubr.msk.bf16.vlgmr.msra.gmra.mrb[0].mxu0 %vm267_vm1, %v633_v5  ;;  %610 = vmatmul.mubr.msk.bf16.vlgmr.msra.gmra.mrb[0].mxu1 %vm267_vm1, %v635_v7 }
  0xe5   : > { %v607_v8 = vpop.f32.mrb[0].mxu0  ;;  %v611_v9 = vpop.f32.mrb[0].mxu1 }
  0xe6   : > { %v318_v10 = vpop.f32.mrb[1].mxu0  ;;  %v334_v11 = vpop.f32.mrb[1].mxu1  ;;  %v405_v23 = vmul.f32 %v607_v8, %v607_v8  ;;  %v409_v35 = vmul.f32 %v611_v9, %v611_v9 }
  0xe7   : > { %v608_v12 = vpop.f32.mrb[2].mxu0  ;;  %v612_v13 = vpop.f32.mrb[2].mxu1  ;;  %v403_v14 = vmul.f32 %v318_v10, %v318_v10  ;;  %v407_v29 = vmul.f32 %v334_v11, %v334_v11 }
  0xe8   : > { %v577_v15 = vpack.c.bf16 %v608_v12, %v607_v8  ;;  %v321_v16 = vpop.f32.mrb[3].mxu0  ;;  %v587_v17 = vpack.c.bf16 %v612_v13, %v611_v9  ;;  %v337_v18 = vpop.f32.mrb[3].mxu1  ;;  %v406_v26 = vmul.f32 %v608_v12, %v608_v12  ;;  %v410_v38 = vmul.f32 %v612_v13, %v612_v13 }
  0xe9   : > { %v572_v19 = vpack.c.bf16 %v321_v16, %v318_v10  ;;  %v389_v20 = vadd.f32 %v321_v16, %v318_v10  ;;  %v404_v21 = vmul.f32 %v321_v16, %v321_v16  ;;  %v582_v22 = vpack.c.bf16 %v337_v18, %v334_v11 }
  0xea   : > { %589 = vst [vmem:[%s210_s30 + $0x8] sm:$0xff] %v577_v15   ;;  %591 = vst [vmem:[%s210_s30 + $0x18] sm:$0xff] %v587_v17   ;;  %v408_v34 = vmul.f32 %v337_v18, %v337_v18 }
  0xeb   : > { %573 = vst [vmem:[%s210_s30] sm:$0xff] %v572_v19   ;;  %v390_v24 = vadd.f32 %v607_v8, %v389_v20  ;;  %v411_v25 = vadd.f32 %v404_v21, %v403_v14  ;;  %590 = vst [vmem:[%s210_s30 + $0x10] sm:$0xff] %v582_v22  }
  0xed   : > { %v412_v27 = vadd.f32 %v411_v25, %v405_v23  ;;  %v391_v28 = vadd.f32 %v608_v12, %v390_v24 }
  0xef   : > { %v392_v30 = vadd.f32 %v391_v28, %v334_v11  ;;  %v413_v31 = vadd.f32 %v412_v27, %v406_v26 }
  0xf1   : > { %v414_v32 = vadd.f32 %v413_v31, %v407_v29  ;;  %v393_v33 = vadd.f32 %v392_v30, %v337_v18 }
  0xf3   : > { %v394_v36 = vadd.f32 %v611_v9, %v393_v33  ;;  %v415_v37 = vadd.f32 %v414_v32, %v408_v34 }
  0xf5   : > { %v395_v39 = vadd.f32 %v612_v13, %v394_v36  ;;  %v416_v40 = vadd.f32 %v415_v37, %v409_v35 }
  0xf7   : > { %v396_v41 = vrot.slane %v395_v39, 4  ;;  %v417_v42 = vadd.f32 %v416_v40, %v410_v38 }
  0xf9   : > { %v397_v43 = vadd.f32 %v396_v41, %v395_v39  ;;  %v418_v44 = vrot.slane %v417_v42, 4 }
  0xfb   : > { %v398_v45 = vrot.slane %v397_v43, 2  ;;  %v419_v46 = vadd.f32 %v418_v44, %v417_v42 }
  0xfd   : > { %v399_v47 = vadd.f32 %v398_v45, %v397_v43  ;;  %v420_v48 = vrot.slane %v419_v46, 2 }
  0xff   : > { %v400_v49 = vrot.slane %v399_v47, 1  ;;  %v421_v50 = vadd.f32 %v420_v48, %v419_v46 }
 0x101   : > { %v401_v51 = vadd.f32 %v400_v49, %v399_v47  ;;  %v422_v52 = vrot.slane %v421_v50, 1 }
 0x103   : > { %402 = vst [vmem:[%s214_s7] sm:$0x1] %v401_v51  ;;  %v423_v53 = vadd.f32 %v422_v52, %v421_v50 }
 0x105   : > { %424 = vst [vmem:[%s217_s10] sm:$0x1] %v423_v53 }
 0x106 PF: > { %s15_s15 = sadd.s32 1, %s642_s15  }
 0x107   : > { %p12_p5 = scmp.ge.s32.totalorder %s15_s15, 4  }
 0x109   :  { %14 = sbr.rel (!%p12_p5) target bundleno = 1 (0x1), region = 82 }

// kernel: resi_block_down_forward.5
= control target key start
LH: loop header
LB: loop body
LE: loop exit
PB: predicated region body
PF: predicated region fallthrough
CT: control target
= control target key end

     0   :  { %s611_s18 = smov 0   ;;  %s644_s0 = inlined_call_operand.vmem [shape: bf16[128,128], index: 0, kind: input, shape index: {}]   ;;  %s645_s1 = inlined_call_operand.vmem [shape: bf16[128,4], index: 1, kind: input, shape index: {}]   ;;  %s646_s2 = inlined_call_operand.vmem [shape: bf16[4,128], index: 2, kind: input, shape index: {}]   ;;  %s647_s3 = inlined_call_operand.vmem [shape: f32[1,128], index: 3, kind: input, shape index: {}]   ;;  %s648_s4 = inlined_call_operand.vmem [shape: f32[1,128], index: 4, kind: input, shape index: {}]   ;;  %s649_s5 = inlined_call_operand.vmem [shape: f32[128,128], index: 5, kind: output, shape index: {}]  }
   0x1 LB: > { %s500_s19 = sadd.s32 4294967295, %s579_s18   ;;  %p504_p0 = scmp.ge.s32.totalorder %s579_s18, 1  ;;  %s579_s18 = sphi %s611_s18, %s15_s18  }
   0x2   : > { %p199_p1 = scmp.lt.s32.totalorder %s579_s18, 3 }
   0x4   : > { %p200_p2 = pnand %p504_p0, %p199_p1 }
   0x5   : > { %v259_v0 = vld [vmem:[%s646_s2] sm:$0x3] (!%p200_p2)  ;;  %vm293_vm0 = vcmask (!%p200_p2), 1041408   ;;  %s505_s22 = sshll.u32 (!%p200_p2), %s500_s19, 3  ;;  %vm280_vm1 = vcmask (!%p200_p2), 31744  }
   0x6   : > { %203 = sbr.rel (%p200_p2) target bundleno = 238 (0xee), region = 40  ;;  %559 = vmatprep.subr.msk.bf16.mxu0 (!%p200_p2), %vm293_vm0, %v259_v0  ;;  %560 = vmatprep.subr.msk.bf16.mxu1 (!%p200_p2), %vm293_vm0, %v259_v0  ;;  %v295_v1 = vsel (!%p200_p2), %vm293_vm0, %v259_v0, 0  ;;  %p233_p3 = scmp.lt.s32.totalorder (!%p200_p2), %s505_s22, 15  ;;  %v519_v11 = vld [vmem:[%s647_s3] ss:$0 sm:$0xff] (!%p200_p2) }
   0x7   : > { %548 = vmatpush3.bf16.msra.mxu0 (!%p200_p2), %v295_v1  ;;  %558 = vmatpush3.bf16.msra.mxu1 (!%p200_p2), %v295_v1  ;;  %v520_v20 = vld [vmem:[%s648_s4] ss:$0 sm:$0xff] (!%p200_p2) }
   0xd   : > { %s651_s22 = smov (!%p233_p3, %s505_s22), 15 }
   0xe   : > { %s506_s23 = sshll.u32 %s651_s22, 2  ;;  %s510_s9 = sshll.u32 %s651_s22, 3 }
   0xf   : > { %s242_s26 = scalar_lea.vmem %s645_s1, %s506_s23  ;;  %s236_s29 = scalar_lea.vmem %s644_s0, %s506_s23 }
  0x10   : > { %v569_v2 = vld [vmem:[%s242_s26] sm:$0xff]   ;;  %v570_v3 = vld [vmem:[%s242_s26 + $0x10] sm:$0xff]   ;;  %v571_v4 = vld [vmem:[%s242_s26 + $0x8] sm:$0xff]   ;;  %s248_s12 = scalar_lea.vmem %s649_s5, %s510_s9 }
  0x11   : > { %549 = vmatprep.mubr.msk.bf16.mxu0 %vm280_vm1, %v569_v2  ;;  %553 = vmatprep.mubr.msk.bf16.mxu1 %vm280_vm1, %v570_v3  ;;  %v572_v5 = vld [vmem:[%s242_s26 + $0x18] sm:$0xff]   ;;  %v539_v6 = vld [vmem:[%s236_s29 + $0x8] sm:$0xff]   ;;  %v524_v8 = vld [vmem:[%s236_s29] sm:$0xff]  }
  0x12   : > { %550 = vmatmul.mubr.msk.bf16.vlgmr.msra.gmra.mrb[0].mxu0 %vm280_vm1, %v571_v4  ;;  %554 = vmatmul.mubr.msk.bf16.vlgmr.msra.gmra.mrb[0].mxu1 %vm280_vm1, %v572_v5  ;;  %v541_v7 = vld [vmem:[%s236_s29 + $0x18] sm:$0xff]   ;;  %v540_v9 = vld [vmem:[%s236_s29 + $0x10] sm:$0xff]   ;;  %v529_v10 = vunpack.c.l.bf16 %v539_v6  ;;  %v525_v13 = vunpack.c.l.bf16 %v524_v8  ;;  %v530_v15 = vunpack.c.h.bf16 %v539_v6  ;;  %v526_v17 = vunpack.c.h.bf16 %v524_v8 }
  0x13   : > { %v537_v12 = vunpack.c.l.bf16 %v541_v7  ;;  %v533_v14 = vunpack.c.l.bf16 %v540_v9  ;;  %v538_v16 = vunpack.c.h.bf16 %v541_v7  ;;  %v534_v19 = vunpack.c.h.bf16 %v540_v9 }
  0x14   : > { %v387_v18 = vmul.f32 %v529_v10, %v519_v11  ;;  %v385_v22 = vmul.f32 %v525_v13, %v519_v11  ;;  %v388_v24 = vmul.f32 %v530_v15, %v519_v11  ;;  %v386_v26 = vmul.f32 %v526_v17, %v519_v11 }
  0x15   : > { %v391_v21 = vmul.f32 %v537_v12, %v519_v11  ;;  %v389_v23 = vmul.f32 %v533_v14, %v519_v11  ;;  %v392_v25 = vmul.f32 %v538_v16, %v519_v11  ;;  %v390_v28 = vmul.f32 %v534_v19, %v519_v11 }
  0x16   : > { %v402_v27 = vadd.f32 %v520_v20, %v387_v18  ;;  %v400_v30 = vadd.f32 %v520_v20, %v385_v22  ;;  %v403_v32 = vadd.f32 %v520_v20, %v388_v24  ;;  %v401_v35 = vadd.f32 %v520_v20, %v386_v26 }
  0x17   : > { %v406_v29 = vadd.f32 %v520_v20, %v391_v21  ;;  %v404_v31 = vadd.f32 %v520_v20, %v389_v23  ;;  %v407_v34 = vadd.f32 %v520_v20, %v392_v25  ;;  %v405_v39 = vadd.f32 %v520_v20, %v390_v28 }
  0xe5   : > { %v551_v33 = vpop.f32.mrb[0].mxu0  ;;  %v555_v37 = vpop.f32.mrb[0].mxu1 }
  0xe6   : > { %v410_v36 = vadd.f32 %v551_v33, %v402_v27  ;;  %v331_v38 = vpop.f32.mrb[1].mxu0  ;;  %v414_v40 = vadd.f32 %v555_v37, %v406_v29  ;;  %v347_v42 = vpop.f32.mrb[1].mxu1 }
  0xe7   : > { %v408_v41 = vadd.f32 %v400_v30, %v331_v38  ;;  %v552_v43 = vpop.f32.mrb[2].mxu0  ;;  %v412_v45 = vadd.f32 %v404_v31, %v347_v42  ;;  %v556_v47 = vpop.f32.mrb[2].mxu1 }
  0xe8   : > { %v418_v44 = vmax.f32 %v410_v36, 0.0  ;;  %v411_v46 = vadd.f32 %v552_v43, %v403_v32  ;;  %v334_v48 = vpop.f32.mrb[3].mxu0  ;;  %v422_v49 = vmax.f32 %v414_v40, 0.0  ;;  %v415_v51 = vadd.f32 %v556_v47, %v407_v34  ;;  %v350_v53 = vpop.f32.mrb[3].mxu1 }
  0xe9   : > { %v416_v50 = vmax.f32 %v408_v41, 0.0  ;;  %v409_v52 = vadd.f32 %v401_v35, %v334_v48  ;;  %v420_v54 = vmax.f32 %v412_v45, 0.0  ;;  %v413_v56 = vadd.f32 %v405_v39, %v350_v53 }
  0xea   : > { %426 = vst [vmem:[%s248_s12 + $0x10] sm:$0xff] %v418_v44  ;;  %v419_v55 = vmax.f32 %v411_v46, 0.0  ;;  %430 = vst [vmem:[%s248_s12 + $0x30] sm:$0xff] %v422_v49  ;;  %v423_v57 = vmax.f32 %v415_v51, 0.0 }
  0xeb   : > { %424 = vst [vmem:[%s248_s12] sm:$0xff] %v416_v50  ;;  %v417_v58 = vmax.f32 %v409_v52, 0.0  ;;  %428 = vst [vmem:[%s248_s12 + $0x20] sm:$0xff] %v420_v54  ;;  %v421_v59 = vmax.f32 %v413_v56, 0.0 }
  0xec   : > { %427 = vst [vmem:[%s248_s12 + $0x18] sm:$0xff] %v419_v55  ;;  %431 = vst [vmem:[%s248_s12 + $0x38] sm:$0xff] %v423_v57 }
  0xed   : > { %425 = vst [vmem:[%s248_s12 + $0x8] sm:$0xff] %v417_v58  ;;  %429 = vst [vmem:[%s248_s12 + $0x28] sm:$0xff] %v421_v59 }
  0xee PF: > { %s15_s18 = sadd.s32 1, %s579_s18  }
  0xef   : > { %p12_p4 = scmp.ge.s32.totalorder %s15_s18, 4  }
  0xf1   :  { %14 = sbr.rel (!%p12_p4) target bundleno = 1 (0x1), region = 73 }

// kernel: resi_block_down_forward.4
= control target key start
LH: loop header
LB: loop body
LE: loop exit
PB: predicated region body
PF: predicated region fallthrough
CT: control target
= control target key end

     0   :  { %s2670_s21 = smov 0   ;;  %s3079_s0 = inlined_call_operand.vmem [shape: bf16[2,8,8,128], index: 0, kind: input, shape index: {}]   ;;  %s3080_s1 = inlined_call_operand.vmem [shape: f32[1,128], index: 1, kind: input, shape index: {}]   ;;  %s3081_s2 = inlined_call_operand.vmem [shape: f32[1,128], index: 2, kind: input, shape index: {}]   ;;  %s3082_s3 = inlined_call_operand.vmem [shape: bf16[9,128,128], index: 3, kind: input, shape index: {}]   ;;  %s3083_s4 = inlined_call_operand.vmem [shape: bf16[2,64,128], index: 4, kind: output, shape index: {0}]   ;;  %s3084_s5 = inlined_call_operand.vmem [shape: f32[2,1,128], index: 5, kind: output, shape index: {1}]   ;;  %s3085_s6 = inlined_call_operand.vmem [shape: f32[2,1,128], index: 6, kind: output, shape index: {2}]  }
   0x1 LB: > { %s1868_s22 = sadd.s32 4294967295, %s2632_s21   ;;  %p1872_p0 = scmp.ge.s32.totalorder %s2632_s21, 1  ;;  %s2632_s21 = sphi %s2670_s21, %s17_s21  }
   0x2   : > { %p217_p1 = scmp.lt.s32.totalorder %s2632_s21, 3 }
   0x4   : > { %p218_p2 = pnand %p1872_p0, %p217_p1 }
   0x5   : > { %v2554_v0 = vld [vmem:[%s3082_s3 + $0x40] sm:$0xff] (!%p218_p2)   ;;  %v2556_v2 = vld [vmem:[%s3082_s3 + $0x48] sm:$0xff] (!%p218_p2)   ;;  %p2689_p3 = scmp.lt.s32.totalorder (!%p218_p2), %s1868_s22, 1  ;;  %v2634_v3 = vmov (!%p218_p2), 0.0   ;;  %v2558_v5 = vld [vmem:[%s3082_s3 + $0x50] sm:$0xff] (!%p218_p2)  }
   0x6   : > { %221 = sbr.rel (%p218_p2) target bundleno = 413 (0x19d), region = 36  ;;  %v2555_v1 = vld [vmem:[%s3082_s3 + $0x100] sm:$0xff] (!%p218_p2)   ;;  %2249 = vmatprep.subr.bf16.mxu1 (!%p218_p2), %v2554_v0  ;;  %324 = vst [vmem:[#allocation2] sm:$0xff] (!%p218_p2), %v2634_v3  ;;  %325 = vst [vmem:[#allocation2 + $0x8] sm:$0x3] (!%p218_p2), %v2634_v3  ;;  %v2557_v4 = vld [vmem:[%s3082_s3 + $0x108] sm:$0xff] (!%p218_p2)  }
   0x7   : > { %326 = vst [vmem:[#allocation2 + $0x10] sm:$0xff] (!%p218_p2), %v2634_v3  ;;  %327 = vst [vmem:[#allocation2 + $0x18] sm:$0x3] (!%p218_p2), %v2634_v3  ;;  %2345 = vmatprep.subr.bf16.mxu0 (!%p218_p2), %v2555_v1  ;;  %2250 = vmatpush3.bf16.msra.mxu1 (!%p218_p2), %v2554_v0  ;;  %v2559_v6 = vld [vmem:[%s3082_s3 + $0x110] sm:$0xff] (!%p218_p2)   ;;  %v2560_v7 = vld [vmem:[%s3082_s3 + $0x58] sm:$0xff] (!%p218_p2)  }
   0x8   : > { %328 = vst [vmem:[#allocation2 + $0x20] sm:$0xff] (!%p218_p2), %v2634_v3  ;;  %329 = vst [vmem:[#allocation2 + $0x28] sm:$0x3] (!%p218_p2), %v2634_v3  ;;  %2346 = vmatpush3.bf16.msra.mxu0 (!%p218_p2), %v2555_v1  ;;  %2251 = vmatprep.subr.bf16.mxu1 (!%p218_p2), %v2556_v2  ;;  %v2561_v8 = vld [vmem:[%s3082_s3 + $0x118] sm:$0xff] (!%p218_p2)   ;;  %v2562_v9 = vld [vmem:[%s3082_s3 + $0x60] sm:$0xff] (!%p218_p2)  }
   0x9   : > { %330 = vst [vmem:[#allocation2 + $0x30] sm:$0xff] (!%p218_p2), %v2634_v3  ;;  %331 = vst [vmem:[#allocation2 + $0x38] sm:$0x3] (!%p218_p2), %v2634_v3  ;;  %2347 = vmatprep.subr.bf16.mxu0 (!%p218_p2), %v2557_v4  ;;  %v2563_v10 = vld [vmem:[%s3082_s3 + $0x120] sm:$0xff] (!%p218_p2)   ;;  %v2564_v11 = vld [vmem:[%s3082_s3 + $0x68] sm:$0xff] (!%p218_p2)  }
   0xa   : > { %332 = vst [vmem:[#allocation2 + $0x40] sm:$0xff] (!%p218_p2), %v2634_v3  ;;  %333 = vst [vmem:[#allocation2 + $0x48] sm:$0x3] (!%p218_p2), %v2634_v3  ;;  %v2755_v13 = vld [vmem:[%s3080_s1] ss:$0 sm:$0xff] (!%p218_p2)  ;;  %v2565_v14 = vld [vmem:[%s3082_s3 + $0x128] sm:$0xff] (!%p218_p2)  }
   0xb   : > { %334 = vst [vmem:[#allocation2 + $0x50] sm:$0xff] (!%p218_p2), %v2634_v3  ;;  %335 = vst [vmem:[#allocation2 + $0x58] sm:$0x3] (!%p218_p2), %v2634_v3  ;;  %2252 = vmatpush3.bf16.msra.mxu1 (!%p218_p2), %v2556_v2  ;;  %v2763_v17 = vld [vmem:[%s3081_s2] ss:$0 sm:$0xff] (!%p218_p2)  ;;  %v2566_v21 = vld [vmem:[%s3082_s3 + $0x70] sm:$0xff] (!%p218_p2)  }
   0xc   : > { %336 = vst [vmem:[#allocation2 + $0x60] sm:$0xff] (!%p218_p2), %v2634_v3  ;;  %337 = vst [vmem:[#allocation2 + $0x68] sm:$0x3] (!%p218_p2), %v2634_v3  ;;  %2348 = vmatpush3.bf16.msra.mxu0 (!%p218_p2), %v2557_v4  ;;  %2253 = vmatprep.subr.bf16.mxu1 (!%p218_p2), %v2558_v5  ;;  %v2567_v24 = vld [vmem:[%s3082_s3 + $0x130] sm:$0xff] (!%p218_p2)   ;;  %v2568_v30 = vld [vmem:[%s3082_s3 + $0x78] sm:$0xff] (!%p218_p2)  }
   0xd   : > { %338 = vst [vmem:[#allocation2 + $0x70] sm:$0xff] %v2634_v3  ;;  %339 = vst [vmem:[#allocation2 + $0x78] sm:$0x3] %v2634_v3  ;;  %s3088_s22 = smov (!%p2689_p3, %s1868_s22), 1  ;;  %2349 = vmatprep.subr.bf16.mxu0 %v2559_v6  ;;  %v381_v27 = vld [vmem:[#allocation2 + $0x1] sm:$0xff]  ;;  %v2569_v35 = vld [vmem:[%s3082_s3 + $0x138] sm:$0xff]  }
   0xe   : > { %340 = vst [vmem:[#allocation2 + $0x80] sm:$0xff] %v2634_v3  ;;  %341 = vst [vmem:[#allocation2 + $0x88] sm:$0x3] %v2634_v3  ;;  %s2089_s16 = sshll.u32 %s3088_s22, 5  ;;  %v2570_v40 = vld [vmem:[%s3082_s3] sm:$0xff]   ;;  %v2572_v47 = vld [vmem:[%s3082_s3 + $0x8] sm:$0xff]   ;;  %s265_s8 = scalar_lea.vmem %s3084_s5, %s3088_s22 }
   0xf   : > { %342 = vst [vmem:[#allocation2 + $0x90] sm:$0xff] %v2634_v3  ;;  %343 = vst [vmem:[#allocation2 + $0x98] sm:$0x3] %v2634_v3  ;;  %2254 = vmatpush3.bf16.msra.mxu1 %v2558_v5  ;;  %s2746_s25 = scalar_lea.vmem %s3079_s0, %s2089_s16  ;;  %v2571_v41 = vld [vmem:[%s3082_s3 + $0x140] sm:$0xff]   ;;  %v2573_v51 = vld [vmem:[%s3082_s3 + $0x148] sm:$0xff]   ;;  %s262_s30 = scalar_lea.vmem %s3083_s4, %s2089_s16 }
  0x10   : > { %2350 = vmatpush3.bf16.msra.mxu0 %v2559_v6  ;;  %2255 = vmatprep.subr.bf16.mxu1 %v2560_v7  ;;  %v2100_v12 = vld [vmem:[%s2746_s25] sm:$0xff]   ;;  %v2135_v20 = vld [vmem:[%s2746_s25 + $0x8] sm:$0xff]   ;;  %v2136_v42 = vld [vmem:[%s2746_s25 + $0x10] sm:$0xff]   ;;  %s268_s11 = scalar_lea.vmem %s3085_s6, %s3088_s22 }
  0x11   : > { %2351 = vmatprep.subr.bf16.mxu0 %v2561_v8  ;;  %v2101_v15 = vunpack.c.l.bf16 %v2100_v12  ;;  %v2102_v16 = vunpack.c.h.bf16 %v2100_v12  ;;  %v2105_v22 = vunpack.c.l.bf16 %v2135_v20  ;;  %v2106_v23 = vunpack.c.h.bf16 %v2135_v20  ;;  %v2137_v50 = vld [vmem:[%s2746_s25 + $0x18] sm:$0xff]   ;;  %v2574_v58 = vld [vmem:[%s3082_s3 + $0x10] sm:$0xff]  }
  0x12   : > { %v2109_v44 = vunpack.c.l.bf16 %v2136_v42  ;;  %v2110_v45 = vunpack.c.h.bf16 %v2136_v42  ;;  %v2113_v52 = vunpack.c.l.bf16 %v2137_v50  ;;  %v2114_v53 = vunpack.c.h.bf16 %v2137_v50  ;;  %v2575_v61 = vld [vmem:[%s3082_s3 + $0x150] sm:$0xff]   ;;  %v2576_v0 = vld [vmem:[%s3082_s3 + $0x18] sm:$0xff]  }
  0x13   : > { %2256 = vmatpush3.bf16.msra.mxu1 %v2560_v7  ;;  %v293_v18 = vmul.f32 %v2101_v15, %v2755_v13  ;;  %v294_v19 = vmul.f32 %v2102_v16, %v2755_v13  ;;  %v295_v28 = vmul.f32 %v2105_v22, %v2755_v13  ;;  %v296_v29 = vmul.f32 %v2106_v23, %v2755_v13  ;;  %v2579_v15 = vld [vmem:[%s3082_s3 + $0x160] sm:$0xff]   ;;  %v2580_v16 = vld [vmem:[%s3082_s3 + $0x28] sm:$0xff]   ;;  %v2584_v20 = vld [vmem:[%s3082_s3 + $0x38] sm:$0xff]  }
  0x14   : > { %2352 = vmatpush3.bf16.msra.mxu0 %v2561_v8  ;;  %2257 = vmatprep.subr.bf16.mxu1 %v2562_v9  ;;  %v297_v48 = vmul.f32 %v2109_v44, %v2755_v13  ;;  %v298_v49 = vmul.f32 %v2110_v45, %v2755_v13  ;;  %v299_v56 = vmul.f32 %v2113_v52, %v2755_v13  ;;  %v2591_v44 = vld [vmem:[%s3082_s3 + $0x190] sm:$0xff]   ;;  %v2595_v52 = vld [vmem:[%s3082_s3 + $0x1a0] sm:$0xff]  }
  0x15   : > { %2353 = vmatprep.subr.bf16.mxu0 %v2563_v10  ;;  %v308_v25 = vadd.f32 %v2763_v17, %v293_v18  ;;  %v309_v26 = vadd.f32 %v2763_v17, %v294_v19  ;;  %v310_v33 = vadd.f32 %v2763_v17, %v295_v28  ;;  %v311_v34 = vadd.f32 %v2763_v17, %v296_v29  ;;  %v2582_v18 = vld [vmem:[%s3082_s3 + $0x30] sm:$0xff]  }
  0x16   : > { %v312_v54 = vadd.f32 %v2763_v17, %v297_v48  ;;  %v313_v55 = vadd.f32 %v2763_v17, %v298_v49  ;;  %v300_v57 = vmul.f32 %v2114_v53, %v2755_v13  ;;  %v314_v62 = vadd.f32 %v2763_v17, %v299_v56  ;;  %v2583_v19 = vld [vmem:[%s3082_s3 + $0x170] sm:$0xff]   ;;  %v2592_v48 = vld [vmem:[%s3082_s3 + $0x98] sm:$0xff]   ;;  %v2596_v53 = vld [vmem:[%s3082_s3 + $0xa8] sm:$0xff]  }
  0x17   : > { %2258 = vmatpush3.bf16.msra.mxu1 %v2562_v9  ;;  %v316_v31 = vmax.f32 %v308_v25, 0.0  ;;  %v317_v32 = vmax.f32 %v309_v26, 0.0  ;;  %v318_v38 = vmax.f32 %v310_v33, 0.0  ;;  %v319_v39 = vmax.f32 %v311_v34, 0.0  ;;  %v2577_v9 = vld [vmem:[%s3082_s3 + $0x158] sm:$0xff]   ;;  %v2587_v26 = vld [vmem:[%s3082_s3 + $0x180] sm:$0xff]  }
  0x18   : > { %2354 = vmatpush3.bf16.msra.mxu0 %v2563_v10  ;;  %2259 = vmatprep.subr.bf16.mxu1 %v2564_v11  ;;  %v320_v59 = vmax.f32 %v312_v54, 0.0  ;;  %v321_v60 = vmax.f32 %v313_v55, 0.0  ;;  %v315_v63 = vadd.f32 %v2763_v17, %v300_v57  ;;  %v322_v5 = vmax.f32 %v314_v62, 0.0  ;;  %v2581_v17 = vld [vmem:[%s3082_s3 + $0x168] sm:$0xff]   ;;  %v2593_v49 = vld [vmem:[%s3082_s3 + $0x198] sm:$0xff]   ;;  %v2598_v55 = vld [vmem:[%s3082_s3 + $0xb0] sm:$0xff]  }
  0x19   : > { %2355 = vmatprep.subr.bf16.mxu0 %v2565_v14  ;;  %345 = vst [vmem:[#allocation2 + $0x11] sm:$0xff] %v316_v31  ;;  %v389_v36 = vpack.c.bf16 %v316_v31, %v381_v27  ;;  %346 = vst [vmem:[#allocation2 + $0x21] sm:$0xff] %v317_v32  ;;  %v944_v37 = vpack.c.bf16 %v317_v32, %v316_v31  ;;  %v2793_v43 = vpack.c.bf16 %v318_v38, %v317_v32  ;;  %v2588_v34 = vld [vmem:[%s3082_s3 + $0x88] sm:$0xff]   ;;  %v2599_v56 = vld [vmem:[%s3082_s3 + $0x1b0] sm:$0xff]  }
  0x1a   : > { %347 = vst [vmem:[#allocation2 + $0x31] sm:$0xff] %v318_v38  ;;  %348 = vst [vmem:[#allocation2 + $0x41] sm:$0xff] %v319_v39  ;;  %v945_v46 = vpack.c.bf16 %v319_v39, %v318_v38  ;;  %v2820_v1 = vpack.c.bf16 %v320_v59, %v319_v39  ;;  %v946_v2 = vpack.c.bf16 %v321_v60, %v320_v59  ;;  %v2824_v6 = vmax.f32 %v315_v63, 0.0  ;;  %v2597_v54 = vld [vmem:[%s3082_s3 + $0x1a8] sm:$0xff]   ;;  %v2600_v57 = vld [vmem:[%s3082_s3 + $0xb8] sm:$0xff]  }
  0x1b   : > { %2260 = vmatpush3.bf16.msra.mxu1 %v2564_v11  ;;  %2265 = vmatprep.mubr.bf16.mxu1 %v389_v36  ;;  %349 = vst [vmem:[#allocation2 + $0x51] sm:$0xff] %v320_v59  ;;  %350 = vst [vmem:[#allocation2 + $0x61] sm:$0xff] %v321_v60  ;;  %v2834_v10 = vpack.c.bf16 %v322_v5, %v321_v60  ;;  %v2602_v59 = vld [vmem:[%s3082_s3 + $0xc0] sm:$0xff]   ;;  %v2604_v62 = vld [vmem:[%s3082_s3 + $0xc8] sm:$0xff]  }
  0x1c   : > { %2356 = vmatpush3.bf16.msra.mxu0 %v2565_v14  ;;  %2261 = vmatprep.subr.bf16.mxu1 %v2566_v21  ;;  %351 = vst [vmem:[#allocation2 + $0x71] sm:$0xff] %v322_v5  ;;  %352 = vst [vmem:[#allocation2 + $0x81] sm:$0xff] %v2824_v6  ;;  %v947_v11 = vpack.c.bf16 %v2824_v6, %v322_v5  ;;  %v2578_v14 = vld [vmem:[%s3082_s3 + $0x20] sm:$0xff]   ;;  %v2605_v63 = vld [vmem:[%s3082_s3 + $0x1c8] sm:$0xff]  }
  0x1d   : > { %2357 = vmatprep.subr.bf16.mxu0 %v2567_v24  ;;  %2361 = vmatprep.mubr.bf16.mxu0 %v944_v37  ;;  %v2590_v37 = vld [vmem:[%s3082_s3 + $0x90] sm:$0xff]   ;;  %v2603_v60 = vld [vmem:[%s3082_s3 + $0x1c0] sm:$0xff]  }
  0x1f   : > { %2262 = vmatpush3.bf16.msra.mxu1 %v2566_v21  ;;  %v2585_v21 = vld [vmem:[%s3082_s3 + $0x178] sm:$0xff]  }
  0x20   : > { %2358 = vmatpush3.bf16.msra.mxu0 %v2567_v24  ;;  %2263 = vmatprep.subr.bf16.mxu1 %v2568_v30  ;;  %v2822_v4 = vld [vmem:[#allocation2 + $0x10] sm:$0xff]  ;;  %v2828_v8 = vld [vmem:[#allocation2 + $0x22] sm:$0xff] }
  0x21   : > { %2359 = vmatprep.subr.bf16.mxu0 %v2569_v35  ;;  %v2826_v7 = vld [vmem:[#allocation2 + $0x12] sm:$0xff]  ;;  %v361_v12 = vpack.c.bf16 %v2822_v4, %v2634_v3  ;;  %v2867_v22 = vld [vmem:[#allocation2 + $0x20] sm:$0xff] }
  0x22   : > { %v1094_v13 = vpack.c.bf16 %v2828_v8, %v2826_v7  ;;  %v2869_v23 = vld [vmem:[#allocation2 + $0x30] sm:$0xff]  ;;  %v2586_v24 = vld [vmem:[%s3082_s3 + $0x80] sm:$0xff]  }
  0x23   : > { %2264 = vmatpush3.bf16.msra.mxu1 %v2568_v30  ;;  %v2874_v25 = vld [vmem:[#allocation2 + $0x32] sm:$0xff]  ;;  %v2879_v27 = vld [vmem:[#allocation2 + $0x42] sm:$0xff]  ;;  %v362_v30 = vpack.c.bf16 %v2869_v23, %v2867_v22 }
  0x24   : > { %2360 = vmatpush3.bf16.msra.mxu0 %v2569_v35  ;;  %2273 = vmatprep.subr.bf16.mxu1 %v2570_v40  ;;  %v2881_v28 = vld [vmem:[#allocation2 + $0x40] sm:$0xff]  ;;  %v2883_v29 = vld [vmem:[#allocation2 + $0x50] sm:$0xff]  ;;  %v1095_v32 = vpack.c.bf16 %v2879_v27, %v2874_v25  ;;  %v2589_v35 = vld [vmem:[%s3082_s3 + $0x188] sm:$0xff]  }
  0x25   : > { %2369 = vmatprep.subr.bf16.mxu0 %v2571_v41  ;;  %v2887_v31 = vld [vmem:[#allocation2 + $0x52] sm:$0xff]  ;;  %v2891_v33 = vld [vmem:[#allocation2 + $0x62] sm:$0xff]  ;;  %v2901_v36 = vpack.c.bf16 %v2883_v29, %v2881_v28 }
  0x26   : > { %2266 = vmatmul.mubr.bf16.vlgmr.msra.gmra.mrb[0].mxu1 %v2793_v43  ;;  %v1096_v38 = vpack.c.bf16 %v2891_v33, %v2887_v31  ;;  %v2908_v39 = vld [vmem:[#allocation2 + $0x60] sm:$0xff] }
  0x27   : > { %2274 = vmatpush3.bf16.msra.mxu1 %v2570_v40  ;;  %2362 = vmatmul.mubr.bf16.vlgmr.msra.gmra.mrb[0].mxu0 %v945_v46  ;;  %v2910_v40 = vld [vmem:[#allocation2 + $0x70] sm:$0xff]  ;;  %v2914_v42 = vld [vmem:[#allocation2 + $0x82] sm:$0xff] }
  0x28   : > { %2370 = vmatpush3.bf16.msra.mxu0 %v2571_v41  ;;  %2275 = vmatprep.subr.bf16.mxu1 %v2572_v47  ;;  %v2912_v41 = vld [vmem:[#allocation2 + $0x72] sm:$0xff]  ;;  %v364_v45 = vpack.c.bf16 %v2910_v40, %v2908_v39  ;;  %v636_v46 = vld [vmem:[#allocation2 + $0x2] sm:$0xff] }
  0x29   : > { %2371 = vmatprep.subr.bf16.mxu0 %v2573_v51  ;;  %2269 = vmatprep.mubr.bf16.mxu1 %v2820_v1  ;;  %v644_v50 = vpack.c.bf16 %v2826_v7, %v636_v46  ;;  %v2980_v5 = vld [vmem:[#allocation2 + $0x80] sm:$0xff]  ;;  %v2607_v7 = vld [vmem:[%s3082_s3 + $0x1d0] sm:$0xff]  }
  0x2a   : > { %2365 = vmatprep.mubr.bf16.mxu0 %v946_v2  ;;  %v2606_v2 = vld [vmem:[%s3082_s3 + $0xd0] sm:$0xff]  }
  0x2b   : > { %2276 = vmatpush3.bf16.msra.mxu1 %v2572_v47  ;;  %v1097_v47 = vpack.c.bf16 %v2914_v42, %v2912_v41 }
  0x2c   : > { %2372 = vmatpush3.bf16.msra.mxu0 %v2573_v51  ;;  %2277 = vmatprep.subr.bf16.mxu1 %v2574_v58  ;;  %v2594_v51 = vld [vmem:[%s3082_s3 + $0xa0] sm:$0xff]  }
  0x2d   : > { %2373 = vmatprep.subr.bf16.mxu0 %v2575_v61 }
  0x2e   : > { %2270 = vmatmul.mubr.bf16.gmra.mrb[4].mxu1 %v2834_v10 }
  0x2f   : > { %2278 = vmatpush3.bf16.msra.mxu1 %v2574_v58  ;;  %2366 = vmatmul.mubr.bf16.gmra.mrb[4].mxu0 %v947_v11  ;;  %v2601_v58 = vld [vmem:[%s3082_s3 + $0x1b8] sm:$0xff]  }
  0x30   : > { %2374 = vmatpush3.bf16.msra.mxu0 %v2575_v61  ;;  %2279 = vmatprep.subr.bf16.mxu1 %v2576_v0  ;;  %v2963_v61 = vpack.c.bf16 %v2874_v25, %v2828_v8  ;;  %v2988_v8 = vpack.c.bf16 %v2912_v41, %v2891_v33  ;;  %v2608_v11 = vld [vmem:[%s3082_s3 + $0xd8] sm:$0xff]   ;;  %v797_v25 = vpack.c.bf16 %v2980_v5, %v2910_v40 }
  0x31   : > { %2375 = vmatprep.subr.bf16.mxu0 %v2577_v9  ;;  %2289 = vmatprep.mubr.bf16.mxu1 %v361_v12  ;;  %v2609_v12 = vld [vmem:[%s3082_s3 + $0x1d8] sm:$0xff]  }
  0x32   : > { %2385 = vmatprep.mubr.bf16.mxu0 %v1094_v13  ;;  %v794_v13 = vpack.c.bf16 %v2867_v22, %v2822_v4  ;;  %v2612_v4 = vld [vmem:[%s3082_s3 + $0xe8] sm:$0xff]   ;;  %v796_v22 = vpack.c.bf16 %v2908_v39, %v2883_v29  ;;  %v1544_v29 = vld [vmem:[#allocation2 + $0x92] sm:$0xff] }
  0x33   : > { %2280 = vmatpush3.bf16.msra.mxu1 %v2576_v0  ;;  %v2973_v0 = vpack.c.bf16 %v2887_v31, %v2879_v27  ;;  %v2624_v27 = vld [vmem:[%s3082_s3 + $0x230] sm:$0xff]  }
  0x34   : > { %2376 = vmatpush3.bf16.msra.mxu0 %v2577_v9  ;;  %2281 = vmatprep.subr.bf16.mxu1 %v2578_v14  ;;  %v1248_v9 = vpack.c.bf16 %v2634_v3, %v2980_v5  ;;  %v2610_v3 = vld [vmem:[%s3082_s3 + $0xe0] sm:$0xff]  }
  0x35   : > { %2377 = vmatprep.subr.bf16.mxu0 %v2579_v15 }
  0x37   : > { %2282 = vmatpush3.bf16.msra.mxu1 %v2578_v14  ;;  %v2611_v14 = vld [vmem:[%s3082_s3 + $0x1e0] sm:$0xff]  }
  0x38   : > { %2378 = vmatpush3.bf16.msra.mxu0 %v2579_v15  ;;  %2283 = vmatprep.subr.bf16.mxu1 %v2580_v16  ;;  %v2613_v15 = vld [vmem:[%s3082_s3 + $0x1e8] sm:$0xff]  }
  0x39   : > { %2379 = vmatprep.subr.bf16.mxu0 %v2581_v17 }
  0x3b   : > { %2284 = vmatpush3.bf16.msra.mxu1 %v2580_v16  ;;  %v2614_v16 = vld [vmem:[%s3082_s3 + $0xf0] sm:$0xff]  }
  0x3c   : > { %2380 = vmatpush3.bf16.msra.mxu0 %v2581_v17  ;;  %2285 = vmatprep.subr.bf16.mxu1 %v2582_v18  ;;  %v2616_v17 = vld [vmem:[%s3082_s3 + $0xf8] sm:$0xff]  }
  0x3d   : > { %2381 = vmatprep.subr.bf16.mxu0 %v2583_v19 }
  0x3f   : > { %2286 = vmatpush3.bf16.msra.mxu1 %v2582_v18  ;;  %v2617_v18 = vld [vmem:[%s3082_s3 + $0x1f8] sm:$0xff]  }
  0x40   : > { %2382 = vmatpush3.bf16.msra.mxu0 %v2583_v19  ;;  %2287 = vmatprep.subr.bf16.mxu1 %v2584_v20  ;;  %v2618_v19 = vld [vmem:[%s3082_s3 + $0x200] sm:$0xff]  }
  0x41   : > { %2383 = vmatprep.subr.bf16.mxu0 %v2585_v21 }
  0x43   : > { %2288 = vmatpush3.bf16.msra.mxu1 %v2584_v20  ;;  %v795_v20 = vpack.c.bf16 %v2881_v28, %v2869_v23  ;;  %v2620_v23 = vld [vmem:[%s3082_s3 + $0x210] sm:$0xff]   ;;  %v2625_v28 = vld [vmem:[%s3082_s3 + $0x238] sm:$0xff]  }
  0x44   : > { %2384 = vmatpush3.bf16.msra.mxu0 %v2585_v21  ;;  %2297 = vmatprep.subr.bf16.mxu1 %v2586_v24  ;;  %v2619_v21 = vld [vmem:[%s3082_s3 + $0x208] sm:$0xff]  }
  0x45   : > { %2393 = vmatprep.subr.bf16.mxu0 %v2587_v26 }
  0x46   : > { %2290 = vmatmul.mubr.bf16.vlgmr.msra.gmra.mrb[0].mxu1 %v362_v30 }
  0x47   : > { %2298 = vmatpush3.bf16.msra.mxu1 %v2586_v24  ;;  %2386 = vmatmul.mubr.bf16.vlgmr.msra.gmra.mrb[0].mxu0 %v1095_v32  ;;  %v1394_v24 = vld [vmem:[#allocation2 + $0x91] sm:$0xff] }
  0x48   : > { %2394 = vmatpush3.bf16.msra.mxu0 %v2587_v26  ;;  %2299 = vmatprep.subr.bf16.mxu1 %v2588_v34  ;;  %v1398_v26 = vpack.c.bf16 %v1394_v24, %v2824_v6  ;;  %v2623_v6 = vld [vmem:[%s3082_s3 + $0x228] sm:$0xff]  }
  0x49   : > { %2395 = vmatprep.subr.bf16.mxu0 %v2589_v35  ;;  %2293 = vmatprep.mubr.bf16.mxu1 %v2901_v36 }
  0x4a   : > { %2389 = vmatprep.mubr.bf16.mxu0 %v1096_v38 }
  0x4b   : > { %2300 = vmatpush3.bf16.msra.mxu1 %v2588_v34 }
  0x4c   : > { %2396 = vmatpush3.bf16.msra.mxu0 %v2589_v35  ;;  %2301 = vmatprep.subr.bf16.mxu1 %v2590_v37 }
  0x4d   : > { %2397 = vmatprep.subr.bf16.mxu0 %v2591_v44 }
  0x4e   : > { %2294 = vmatmul.mubr.bf16.gmra.mrb[4].mxu1 %v364_v45 }
  0x4f   : > { %2302 = vmatpush3.bf16.msra.mxu1 %v2590_v37  ;;  %2390 = vmatmul.mubr.bf16.gmra.mrb[4].mxu0 %v1097_v47 }
  0x50   : > { %2398 = vmatpush3.bf16.msra.mxu0 %v2591_v44  ;;  %2303 = vmatprep.subr.bf16.mxu1 %v2592_v48 }
  0x51   : > { %2399 = vmatprep.subr.bf16.mxu0 %v2593_v49  ;;  %2313 = vmatprep.mubr.bf16.mxu1 %v644_v50 }
  0x52   : > { %2409 = vmatprep.mubr.bf16.mxu0 %v362_v30  ;;  %v1548_v30 = vpack.c.bf16 %v1544_v29, %v2914_v42 }
  0x53   : > { %2304 = vmatpush3.bf16.msra.mxu1 %v2592_v48 }
  0x54   : > { %2400 = vmatpush3.bf16.msra.mxu0 %v2593_v49  ;;  %2305 = vmatprep.subr.bf16.mxu1 %v2594_v51 }
  0x55   : > { %2401 = vmatprep.subr.bf16.mxu0 %v2595_v52 }
  0x57   : > { %2306 = vmatpush3.bf16.msra.mxu1 %v2594_v51 }
  0x58   : > { %2402 = vmatpush3.bf16.msra.mxu0 %v2595_v52  ;;  %2307 = vmatprep.subr.bf16.mxu1 %v2596_v53 }
  0x59   : > { %2403 = vmatprep.subr.bf16.mxu0 %v2597_v54 }
  0x5b   : > { %2308 = vmatpush3.bf16.msra.mxu1 %v2596_v53 }
  0x5c   : > { %2404 = vmatpush3.bf16.msra.mxu0 %v2597_v54  ;;  %2309 = vmatprep.subr.bf16.mxu1 %v2598_v55 }
  0x5d   : > { %2405 = vmatprep.subr.bf16.mxu0 %v2599_v56 }
  0x5f   : > { %2310 = vmatpush3.bf16.msra.mxu1 %v2598_v55 }
  0x60   : > { %2406 = vmatpush3.bf16.msra.mxu0 %v2599_v56  ;;  %2311 = vmatprep.subr.bf16.mxu1 %v2600_v57 }
  0x61   : > { %2407 = vmatprep.subr.bf16.mxu0 %v2601_v58 }
  0x63   : > { %2312 = vmatpush3.bf16.msra.mxu1 %v2600_v57 }
  0x64   : > { %2408 = vmatpush3.bf16.msra.mxu0 %v2601_v58  ;;  %2321 = vmatprep.subr.bf16.mxu1 %v2602_v59 }
  0x65   : > { %2417 = vmatprep.subr.bf16.mxu0 %v2603_v60 }
  0x66   : > { %2314 = vmatmul.mubr.bf16.vlgmr.msra.gmra.mrb[0].mxu1 %v2963_v61 }
  0x67   : > { %2322 = vmatpush3.bf16.msra.mxu1 %v2602_v59  ;;  %2410 = vmatmul.mubr.bf16.vlgmr.msra.gmra.mrb[0].mxu0 %v2901_v36 }
  0x68   : > { %2418 = vmatpush3.bf16.msra.mxu0 %v2603_v60  ;;  %2323 = vmatprep.subr.bf16.mxu1 %v2604_v62 }
  0x69   : > { %2419 = vmatprep.subr.bf16.mxu0 %v2605_v63  ;;  %2317 = vmatprep.mubr.bf16.mxu1 %v2973_v0 }
  0x6a   : > { %2413 = vmatprep.mubr.bf16.mxu0 %v364_v45 }
  0x6b   : > { %2324 = vmatpush3.bf16.msra.mxu1 %v2604_v62 }
  0x6c   : > { %2420 = vmatpush3.bf16.msra.mxu0 %v2605_v63  ;;  %2325 = vmatprep.subr.bf16.mxu1 %v2606_v2 }
  0x6d   : > { %2421 = vmatprep.subr.bf16.mxu0 %v2607_v7 }
  0x6e   : > { %2318 = vmatmul.mubr.bf16.gmra.mrb[4].mxu1 %v2988_v8 }
  0x6f   : > { %2326 = vmatpush3.bf16.msra.mxu1 %v2606_v2  ;;  %2414 = vmatmul.mubr.bf16.gmra.mrb[4].mxu0 %v1248_v9 }
  0x70   : > { %2422 = vmatpush3.bf16.msra.mxu0 %v2607_v7  ;;  %2327 = vmatprep.subr.bf16.mxu1 %v2608_v11 }
  0x71   : > { %2423 = vmatprep.subr.bf16.mxu0 %v2609_v12  ;;  %2337 = vmatprep.mubr.bf16.mxu1 %v794_v13 }
  0x72   : > { %2433 = vmatprep.mubr.bf16.mxu0 %v2793_v43  ;;  %v2615_v43 = vld [vmem:[%s3082_s3 + $0x1f0] sm:$0xff]  }
  0x73   : > { %2328 = vmatpush3.bf16.msra.mxu1 %v2608_v11 }
  0x74   : > { %2424 = vmatpush3.bf16.msra.mxu0 %v2609_v12  ;;  %2329 = vmatprep.subr.bf16.mxu1 %v2610_v3 }
  0x75   : > { %2425 = vmatprep.subr.bf16.mxu0 %v2611_v14 }
  0x77   : > { %2330 = vmatpush3.bf16.msra.mxu1 %v2610_v3 }
  0x78   : > { %2426 = vmatpush3.bf16.msra.mxu0 %v2611_v14  ;;  %2331 = vmatprep.subr.bf16.mxu1 %v2612_v4 }
  0x79   : > { %2427 = vmatprep.subr.bf16.mxu0 %v2613_v15 }
  0x7b   : > { %2332 = vmatpush3.bf16.msra.mxu1 %v2612_v4 }
  0x7c   : > { %2428 = vmatpush3.bf16.msra.mxu0 %v2613_v15  ;;  %2333 = vmatprep.subr.bf16.mxu1 %v2614_v16 }
  0x7d   : > { %2429 = vmatprep.subr.bf16.mxu0 %v2615_v43 }
  0x7f   : > { %2334 = vmatpush3.bf16.msra.mxu1 %v2614_v16 }
  0x80   : > { %2430 = vmatpush3.bf16.msra.mxu0 %v2615_v43  ;;  %2335 = vmatprep.subr.bf16.mxu1 %v2616_v17 }
  0x81   : > { %2431 = vmatprep.subr.bf16.mxu0 %v2617_v18 }
  0x83   : > { %2336 = vmatpush3.bf16.msra.mxu1 %v2616_v17 }
  0x84   : > { %2432 = vmatpush3.bf16.msra.mxu0 %v2617_v18  ;;  %2465 = vmatprep.subr.bf16.mxu1 %v2618_v19 }
  0x85   : > { %2441 = vmatprep.subr.bf16.mxu0 %v2618_v19 }
  0x86   : > { %2338 = vmatmul.mubr.bf16.vlgmr.msra.gmra.mrb[0].mxu1 %v795_v20 }
  0x87   : > { %2434 = vmatmul.mubr.bf16.vlgmr.msra.gmra.mrb[0].mxu0 %v2820_v1  ;;  %2473 = vmatpush3.bf16.msra.mxu1 %v2618_v19  ;;  %v2621_v1 = vld [vmem:[%s3082_s3 + $0x218] sm:$0xff]  }
  0x88   : > { %2442 = vmatpush3.bf16.msra.mxu0 %v2618_v19  ;;  %2466 = vmatprep.subr.bf16.mxu1 %v2619_v21 }
  0x89   : > { %2443 = vmatprep.subr.bf16.mxu0 %v2619_v21  ;;  %2341 = vmatprep.mubr.bf16.mxu1 %v796_v22 }
  0x8a   : > { %2437 = vmatprep.mubr.bf16.mxu0 %v2834_v10  ;;  %v2622_v10 = vld [vmem:[%s3082_s3 + $0x220] sm:$0xff]  }
  0x8b   : > { %2474 = vmatpush3.bf16.msra.mxu1 %v2619_v21 }
  0x8c   : > { %2444 = vmatpush3.bf16.msra.mxu0 %v2619_v21  ;;  %2467 = vmatprep.subr.bf16.mxu1 %v2620_v23 }
  0x8d   : > { %2445 = vmatprep.subr.bf16.mxu0 %v2620_v23 }
  0x8e   : > { %2342 = vmatmul.mubr.bf16.gmra.mrb[4].mxu1 %v797_v25 }
  0x8f   : > { %2438 = vmatmul.mubr.bf16.gmra.mrb[4].mxu0 %v1398_v26  ;;  %2475 = vmatpush3.bf16.msra.mxu1 %v2620_v23 }
  0x90   : > { %2446 = vmatpush3.bf16.msra.mxu0 %v2620_v23  ;;  %2468 = vmatprep.subr.bf16.mxu1 %v2621_v1 }
  0x91   : > { %2447 = vmatprep.subr.bf16.mxu0 %v2621_v1  ;;  %2457 = vmatprep.mubr.bf16.mxu0 %v2963_v61 }
  0x92   : > { %2461 = vmatprep.mubr.bf16.mxu1 %v2988_v8 }
  0x93   : > { %2476 = vmatpush3.bf16.msra.mxu1 %v2621_v1 }
  0x94   : > { %2448 = vmatpush3.bf16.msra.mxu0 %v2621_v1  ;;  %2469 = vmatprep.subr.bf16.mxu1 %v2622_v10 }
  0x95   : > { %2449 = vmatprep.subr.bf16.mxu0 %v2622_v10 }
  0x97   : > { %2477 = vmatpush3.bf16.msra.mxu1 %v2622_v10 }
  0x98   : > { %2450 = vmatpush3.bf16.msra.mxu0 %v2622_v10  ;;  %2470 = vmatprep.subr.bf16.mxu1 %v2623_v6 }
  0x99   : > { %2451 = vmatprep.subr.bf16.mxu0 %v2623_v6 }
  0x9b   : > { %2478 = vmatpush3.bf16.msra.mxu1 %v2623_v6 }
  0x9c   : > { %2452 = vmatpush3.bf16.msra.mxu0 %v2623_v6  ;;  %2471 = vmatprep.subr.bf16.mxu1 %v2624_v27 }
  0x9d   : > { %2453 = vmatprep.subr.bf16.mxu0 %v2624_v27 }
  0x9f   : > { %2479 = vmatpush3.bf16.msra.mxu1 %v2624_v27 }
  0xa0   : > { %2454 = vmatpush3.bf16.msra.mxu0 %v2624_v27  ;;  %2472 = vmatprep.subr.bf16.mxu1 %v2625_v28 }
  0xa1   : > { %2455 = vmatprep.subr.bf16.mxu0 %v2625_v28 }
  0xa3   : > { %2480 = vmatpush3.bf16.msra.mxu1 %v2625_v28 }
  0xa4   : > { %2456 = vmatpush3.bf16.msra.mxu0 %v2625_v28 }
  0xa6   : > { %2462 = vmatmul.mubr.bf16.vlgmr.msra.gmra.mrb[8].mxu1 %v1548_v30 }
  0xa7   : > { %2458 = vmatmul.mubr.bf16.vlgmr.msra.gmra.mrb[0].mxu0 %v2973_v0 }
 0x159   : > { %v2339_v31 = vpop.f32.mrb[0].mxu1 }
 0x15a   : > { %v897_v32 = vpop.f32.mrb[1].mxu1 }
 0x15b   : > { %v2340_v33 = vpop.f32.mrb[2].mxu1 }
 0x15c   : > { %v900_v34 = vpop.f32.mrb[3].mxu1 }
 0x161   : > { %v2343_v35 = vpop.f32.mrb[4].mxu1 }
 0x162   : > { %v2439_v36 = vpop.f32.mrb[4].mxu0  ;;  %v913_v37 = vpop.f32.mrb[5].mxu1 }
 0x163   : > { %v2485_v38 = vadd.f32 %v2439_v36, %v2343_v35  ;;  %v1514_v39 = vpop.f32.mrb[5].mxu0  ;;  %v2344_v40 = vpop.f32.mrb[6].mxu1 }
 0x164   : > { %v2487_v41 = vadd.f32 %v1514_v39, %v913_v37  ;;  %v2440_v44 = vpop.f32.mrb[6].mxu0  ;;  %v916_v45 = vpop.f32.mrb[7].mxu1 }
 0x165   : > { %v2489_v42 = vadd.f32 %v2440_v44, %v2344_v40  ;;  %v1517_v46 = vpop.f32.mrb[7].mxu0 }
 0x166   : > { %v2491_v47 = vadd.f32 %v1517_v46, %v916_v45 }
 0x179   : > { %v2463_v48 = vpop.f32.mrb[8].mxu1 }
 0x17a   : > { %v2459_v49 = vpop.f32.mrb[0].mxu0  ;;  %v2486_v50 = vadd.f32 %v2485_v38, %v2463_v48  ;;  %v1664_v51 = vpop.f32.mrb[9].mxu1 }
 0x17b   : > { %v2481_v52 = vadd.f32 %v2459_v49, %v2339_v31  ;;  %v1648_v53 = vpop.f32.mrb[1].mxu0  ;;  %v2488_v54 = vadd.f32 %v2487_v41, %v1664_v51  ;;  %v2464_v55 = vpop.f32.mrb[10].mxu1 }
 0x17c   : > { %v2482_v56 = vadd.f32 %v1648_v53, %v897_v32  ;;  %v2460_v57 = vpop.f32.mrb[2].mxu0  ;;  %v2490_v58 = vadd.f32 %v2489_v42, %v2464_v55  ;;  %v1667_v59 = vpop.f32.mrb[11].mxu1  ;;  %v1747_v21 = vmul.f32 %v2486_v50, %v2486_v50 }
 0x17d   : > { %v2483_v60 = vadd.f32 %v2460_v57, %v2340_v33  ;;  %v1651_v61 = vpop.f32.mrb[3].mxu0  ;;  %v2492_v62 = vadd.f32 %v2491_v47, %v1667_v59  ;;  %v1743_v12 = vmul.f32 %v2481_v52, %v2481_v52  ;;  %v1745_v16 = vmul.f32 %v2488_v54, %v2488_v54 }
 0x17e   : > { %v2133_v63 = vpack.c.bf16 %v2490_v58, %v2486_v50  ;;  %v2484_v0 = vadd.f32 %v1651_v61, %v900_v34  ;;  %v1741_v7 = vmul.f32 %v2482_v56, %v2482_v56  ;;  %v1748_v23 = vmul.f32 %v2490_v58, %v2490_v58 }
 0x17f   : > { %v2123_v2 = vpack.c.bf16 %v2483_v60, %v2481_v52  ;;  %v2128_v5 = vpack.c.bf16 %v2492_v62, %v2488_v54  ;;  %v1744_v14 = vmul.f32 %v2483_v60, %v2483_v60  ;;  %v1746_v19 = vmul.f32 %v2492_v62, %v2492_v62 }
 0x180   : > { %2140 = vst [vmem:[%s262_s30 + $0x18] sm:$0xff] %v2133_v63   ;;  %v2118_v8 = vpack.c.bf16 %v2484_v0, %v2482_v56  ;;  %v1727_v9 = vadd.f32 %v2484_v0, %v2482_v56  ;;  %v1742_v11 = vmul.f32 %v2484_v0, %v2484_v0 }
 0x181   : > { %2138 = vst [vmem:[%s262_s30 + $0x8] sm:$0xff] %v2123_v2   ;;  %2139 = vst [vmem:[%s262_s30 + $0x10] sm:$0xff] %v2128_v5  }
 0x182   : > { %2119 = vst [vmem:[%s262_s30] sm:$0xff] %v2118_v8   ;;  %v1728_v13 = vadd.f32 %v2481_v52, %v1727_v9  ;;  %v1749_v3 = vadd.f32 %v1742_v11, %v1741_v7 }
 0x184   : > { %v1750_v4 = vadd.f32 %v1749_v3, %v1743_v12  ;;  %v1729_v15 = vadd.f32 %v2483_v60, %v1728_v13 }
 0x186   : > { %v1730_v43 = vadd.f32 %v2488_v54, %v1729_v15  ;;  %v1751_v17 = vadd.f32 %v1750_v4, %v1744_v14 }
 0x188   : > { %v1731_v18 = vadd.f32 %v2492_v62, %v1730_v43  ;;  %v1752_v20 = vadd.f32 %v1751_v17, %v1745_v16 }
 0x18a   : > { %v1732_v22 = vadd.f32 %v2486_v50, %v1731_v18  ;;  %v1753_v24 = vadd.f32 %v1752_v20, %v1746_v19 }
 0x18c   : > { %v1733_v25 = vadd.f32 %v2490_v58, %v1732_v22  ;;  %v1754_v26 = vadd.f32 %v1753_v24, %v1747_v21 }
 0x18e   : > { %v1734_v1 = vrot.slane %v1733_v25, 4  ;;  %v1755_v10 = vadd.f32 %v1754_v26, %v1748_v23 }
 0x190   : > { %v1735_v6 = vadd.f32 %v1734_v1, %v1733_v25  ;;  %v1756_v27 = vrot.slane %v1755_v10, 4 }
 0x192   : > { %v1736_v28 = vrot.slane %v1735_v6, 2  ;;  %v1757_v29 = vadd.f32 %v1756_v27, %v1755_v10 }
 0x194   : > { %v1737_v30 = vadd.f32 %v1736_v28, %v1735_v6  ;;  %v1758_v31 = vrot.slane %v1757_v29, 2 }
 0x196   : > { %v1738_v32 = vrot.slane %v1737_v30, 1  ;;  %v1759_v33 = vadd.f32 %v1758_v31, %v1757_v29 }
 0x198   : > { %v1739_v34 = vadd.f32 %v1738_v32, %v1737_v30  ;;  %v1760_v35 = vrot.slane %v1759_v33, 1 }
 0x19a   : > { %1740 = vst [vmem:[%s265_s8] sm:$0x1] %v1739_v34  ;;  %v1761_v36 = vadd.f32 %v1760_v35, %v1759_v33 }
 0x19c   : > { %1762 = vst [vmem:[%s268_s11] sm:$0x1] %v1761_v36 }
 0x19d PF: > { %s17_s21 = sadd.s32 1, %s2632_s21  }
 0x19e   : > { %p14_p4 = scmp.ge.s32.totalorder %s17_s21, 4  }
 0x1a0   :  { %16 = sbr.rel (!%p14_p4) target bundleno = 1 (0x1), region = 100 }

</bundles_post_ra>
